<compile_context>
chip_gen: v6e
topology: v6e:2x2x1
jax: 0.10.0
libtpu: 0.0.40
codegen_flags: <defaults>
</compile_context>

<pallas_src>
import functools

import jax
import jax.numpy as jnp
from jax import lax
from jax.experimental import pallas as pl
from jax.experimental.pallas import tpu as pltpu


def _shift_cols(v, offset, zpad):
    """out[:, j] = v[:, j + offset], zero-filled outside [0, M).  offset static."""
    if offset == 0:
        return v
    size = v.shape[1]
    if offset > 0:
        return jnp.concatenate([v[:, offset:], zpad[:, :offset]], axis=1)
    return jnp.concatenate([zpad[:, :(-offset)], v[:, :size + offset]], axis=1)


def _recurrent_block_kernel(w_ref, gb_ref, x_ref, o_ref, *, hh, ww, t):
    """Fully fused Recurrent_block forward.

    w_ref : (C, 9*C)  conv weights, column index = (ky*3 + kx)*C + c_in
    gb_ref: (C, 2)    column 0 = gamma, column 1 = beta
    x_ref : (C, M)    block input, channel-major, M = N*H*W (lane-dense)
    o_ref : (C, M)    final x1 = ReLU(BN(conv(...)))
    """
    cc, mm = x_ref.shape
    inv_count = 1.0 / float(mm)            # BN stats are over all N*H*W

    weights = w_ref[...]                    # (C, 9C)
    gamma = gb_ref[:, 0:1]                  # (C, 1)
    beta = gb_ref[:, 1:2]                   # (C, 1)
    x_flat = x_ref[...]                     # (C, M)

    # Border masks on the flattened (n*H*W + y*W + x) column index.
    col_idx = lax.broadcasted_iota(jnp.int32, (1, mm), 1)
    r = col_idx % (hh * ww)                 # position inside one image
    xp = col_idx % ww                       # column inside one row
    m_top = (r >= ww).astype(jnp.float32)                 # y >= 1
    m_bot = (r < (hh - 1) * ww).astype(jnp.float32)       # y <= H-2
    m_left = (xp >= 1).astype(jnp.float32)                # x >= 1
    m_right = (xp <= ww - 2).astype(jnp.float32)          # x <= W-2
    row_m = {-1: m_top, 0: None, 1: m_bot}
    col_m = {-1: m_left, 0: None, 1: m_right}

    # (offset, mask) per tap, enumerated in (ky, kx) order to match w_ref.
    tap_specs = []
    for dy in (-1, 0, 1):
        for dx in (-1, 0, 1):
            m = row_m[dy]
            if col_m[dx] is not None:
                m = col_m[dx] if m is None else m * col_m[dx]
            tap_specs.append((dy * ww + dx, m))

    zpad = jnp.zeros((cc, ww + 1), jnp.float32)     # max |offset| = W + 1

    inp = x_flat
    x1 = x_flat                                     # overwritten on step 0
    for step in range(t + 1):
        # im2col on the lane-dense layout: 9 shifted+masked copies stacked
        # along sublanes -> (9C, M); ONE MXU contraction of depth 9*C with
        # the spatial axis (M) as the lane/output dimension.
        taps = []
        for off, m in tap_specs:
            tap = _shift_cols(inp, off, zpad)
            if m is not None:
                tap = tap * m
            taps.append(tap)
        col = jnp.concatenate(taps, axis=0)                         # (9C, M)
        acc = lax.dot_general(
            weights, col,
            dimension_numbers=(((1,), (0,)), ((), ())),
            preferred_element_type=jnp.float32)                     # (C, M)

        # Training-mode BatchNorm: two-pass (numerically safe) biased variance.
        # (Conv bias is exactly cancelled by the mean subtraction -> omitted.)
        mean = jnp.sum(acc, axis=1, keepdims=True) * inv_count      # (C, 1)
        cen = acc - mean
        var = jnp.sum(cen * cen, axis=1, keepdims=True) * inv_count
        scale = gamma * lax.rsqrt(var + 1e-5)
        x1 = jnp.maximum(cen * scale + beta, 0.0)                   # BN + ReLU
        if step < t:
            inp = x_flat + x1                                       # residual

    o_ref[...] = x1


@functools.partial(jax.jit, static_argnames=("t",))
def recurrent_block(x_nchw, w_oihw, b, gamma, beta, t=2):
    """Recurrent_block.forward.  x_nchw: (N, C, H, W), returns (N, C, H, W).

    `b` (conv bias) is accepted for interface parity but unused: under
    training-mode BatchNorm the per-channel bias is exactly cancelled by the
    mean subtraction, so the normalized output is identical.
    """
    if t < 1:
        raise ValueError("t must be >= 1 (matches the PyTorch module).")
    del b
    n, c, h, w = x_nchw.shape
    m = n * h * w

    # Lane-dense channel-major view: column index = n*H*W + y*W + x.
    x_flat = jnp.transpose(x_nchw, (1, 0, 2, 3)).reshape(c, m).astype(jnp.float32)
    # (Cout, Cin, 3, 3) -> (Cout, ky, kx, Cin) -> (Cout, 9*Cin).
    w2 = jnp.transpose(w_oihw, (0, 2, 3, 1)).reshape(c, 9 * c).astype(jnp.float32)
    gb = jnp.stack([gamma.astype(jnp.float32), beta.astype(jnp.float32)], axis=1)

    kernel = functools.partial(_recurrent_block_kernel, hh=h, ww=w, t=t)
    # TODO(synk): for images too large to keep (C, N*H*W) resident in VMEM,
    # tile rows with a 1-row halo and finish the BN reduction across tiles.
    # TODO(synk): on v7x, split M 2-ways ("parallel") + cross-core BN reduce
    # to use both TensorCores; skipped here (whole problem is ~8 KiB).
    out_flat = pl.pallas_call(
        kernel,
        out_shape=jax.ShapeDtypeStruct((c, m), jnp.float32),
        grid_spec=pltpu.PrefetchScalarGridSpec(
            num_scalar_prefetch=0,
            grid=(1,),
            in_specs=[
                pl.BlockSpec((c, 9 * c), lambda i: (0, 0)),
                pl.BlockSpec((c, 2), lambda i: (0, 0)),
                pl.BlockSpec((c, m), lambda i: (0, 0)),
            ],
            out_specs=pl.BlockSpec((c, m), lambda i: (0, 0)),
        ),
        compiler_params=pltpu.CompilerParams(
            dimension_semantics=("arbitrary",),
            vmem_limit_bytes=32 * 1024 * 1024),
    )(w2, gb, x_flat)

    return jnp.transpose(out_flat.reshape(c, n, h, w), (1, 0, 2, 3))


# ---------------------------------------------------------------------------
# Pure-JAX reference (lax.conv) for correctness checking
# ---------------------------------------------------------------------------
def _reference(x_nchw, w_oihw, b, gamma, beta, t=2):
    def conv_bn_relu(inp):
        y = lax.conv_general_dilated(
            inp, w_oihw, window_strides=(1, 1), padding="SAME",
            dimension_numbers=("NCHW", "OIHW", "NCHW"))
        y = y + b.reshape(1, -1, 1, 1)
        mean = jnp.mean(y, axis=(0, 2, 3), keepdims=True)
        var = jnp.mean((y - mean) ** 2, axis=(0, 2, 3), keepdims=True)
        y = (y - mean) * lax.rsqrt(var + 1e-5)
        y = y * gamma.reshape(1, -1, 1, 1) + beta.reshape(1, -1, 1, 1)
        return jnp.maximum(y, 0.0)

    x1 = conv_bn_relu(x_nchw)
    for _ in range(t):
        x1 = conv_bn_relu(x_nchw + x1)
    return x1


if __name__ == "__main__":
    N, C, H, W = 2, 4, 16, 16
    t = 2

    key = jax.random.PRNGKey(0)
    kx, kw, kb, kg, kbt = jax.random.split(key, 5)

    fan_in = C * 3 * 3
    bound = 1.0 / (fan_in ** 0.5)

    x = jax.random.normal(kx, (N, C, H, W), jnp.float32)
    w = jax.random.uniform(kw, (C, C, 3, 3), jnp.float32, -bound, bound)
    b = jax.random.uniform(kb, (C,), jnp.float32, -bound, bound)
    gamma = 1.0 + 0.1 * jax.random.normal(kg, (C,), jnp.float32)
    beta = 0.1 * jax.random.normal(kbt, (C,), jnp.float32)

    out = jax.block_until_ready(recurrent_block(x, w, b, gamma, beta, t=t))

    ref = _reference(x, w, b, gamma, beta, t=t)
    assert out.shape == (N, C, H, W)
    assert jnp.allclose(out, ref, atol=1e-4, rtol=1e-4), "mismatch vs reference"

    print("KERNEL_OK")
</pallas_src>

<mosaic_0001>
module attributes {stable_mosaic.version = 11 : i64} {
  func.func @_recurrent_block_kernel(%arg0: i32, %arg1: memref<4x36xf32, #tpu.memory_space<vmem>>, %arg2: memref<4x2xf32, #tpu.memory_space<vmem>>, %arg3: memref<4x512xf32, #tpu.memory_space<vmem>>, %arg4: memref<4x512xf32, #tpu.memory_space<vmem>>) attributes {dimension_semantics = [#tpu.dimension_semantics<arbitrary>], iteration_bounds = array<i64: 1>, scalar_prefetch = 0 : i64, scratch_operands = 0 : i64, tpu.core_type = #tpu.core_type<tc>, window_params = [{pipeline_mode = #tpu.pipeline_mode<synchronous>, transform_indices = @transform_0, window_bounds = array<i64: 4, 36>}, {pipeline_mode = #tpu.pipeline_mode<synchronous>, transform_indices = @transform_1, window_bounds = array<i64: 4, 2>}, {pipeline_mode = #tpu.pipeline_mode<synchronous>, transform_indices = @transform_2, window_bounds = array<i64: 4, 512>}, {pipeline_mode = #tpu.pipeline_mode<synchronous>, transform_indices = @transform_3, window_bounds = array<i64: 4, 512>}]} {
    %c0 = arith.constant 0 : index
    %c0_0 = arith.constant 0 : index
    %0 = vector.load %arg1[%c0, %c0_0] : memref<4x36xf32, #tpu.memory_space<vmem>>, vector<4x36xf32>
    %c0_1 = arith.constant 0 : index
    %c0_2 = arith.constant 0 : index
    %1 = vector.load %arg2[%c0_1, %c0_2] : memref<4x2xf32, #tpu.memory_space<vmem>>, vector<4x1xf32>
    %c0_3 = arith.constant 0 : index
    %c1 = arith.constant 1 : index
    %2 = vector.load %arg2[%c0_3, %c1] : memref<4x2xf32, #tpu.memory_space<vmem>>, vector<4x1xf32>
    %c0_4 = arith.constant 0 : index
    %c0_5 = arith.constant 0 : index
    %3 = vector.load %arg3[%c0_4, %c0_5] : memref<4x512xf32, #tpu.memory_space<vmem>>, vector<4x512xf32>
    %4 = tpu.iota {dimensions = array<i32: 1>} : vector<1x512xi32>
    %c256_i32 = arith.constant 256 : i32
    %c0_i32 = arith.constant 0 : i32
    %5 = arith.cmpi eq, %c256_i32, %c0_i32 : i32
    %c1_i32 = arith.constant 1 : i32
    %6 = arith.select %5, %c1_i32, %c256_i32 : i32
    %7 = vector.broadcast %6 : i32 to vector<1x512xi32>
    %8 = arith.remsi %4, %7 : vector<1x512xi32>
    %c0_i32_6 = arith.constant 0 : i32
    %9 = vector.broadcast %c0_i32_6 : i32 to vector<1x512xi32>
    %10 = arith.cmpi ne, %8, %9 : vector<1x512xi32>
    %c0_i32_7 = arith.constant 0 : i32
    %11 = vector.broadcast %c0_i32_7 : i32 to vector<1x512xi32>
    %12 = arith.cmpi slt, %8, %11 : vector<1x512xi32>
    %c0_i32_8 = arith.constant 0 : i32
    %13 = arith.cmpi slt, %6, %c0_i32_8 : i32
    %14 = vector.broadcast %13 : i1 to vector<1x512xi1>
    %15 = vector.broadcast %14 : vector<1x512xi1> to vector<1x512xi1>
    %16 = arith.xori %12, %15 : vector<1x512xi1>
    %17 = arith.andi %16, %10 : vector<1x512xi1>
    %18 = vector.broadcast %6 : i32 to vector<1x512xi32>
    %19 = arith.addi %8, %18 : vector<1x512xi32>
    %20 = arith.select %17, %19, %8 : vector<1x512xi1>, vector<1x512xi32>
    %c16_i32 = arith.constant 16 : i32
    %c0_i32_9 = arith.constant 0 : i32
    %21 = arith.cmpi eq, %c16_i32, %c0_i32_9 : i32
    %c1_i32_10 = arith.constant 1 : i32
    %22 = arith.select %21, %c1_i32_10, %c16_i32 : i32
    %23 = vector.broadcast %22 : i32 to vector<1x512xi32>
    %24 = arith.remsi %4, %23 : vector<1x512xi32>
    %c0_i32_11 = arith.constant 0 : i32
    %25 = vector.broadcast %c0_i32_11 : i32 to vector<1x512xi32>
    %26 = arith.cmpi ne, %24, %25 : vector<1x512xi32>
    %c0_i32_12 = arith.constant 0 : i32
    %27 = vector.broadcast %c0_i32_12 : i32 to vector<1x512xi32>
    %28 = arith.cmpi slt, %24, %27 : vector<1x512xi32>
    %c0_i32_13 = arith.constant 0 : i32
    %29 = arith.cmpi slt, %22, %c0_i32_13 : i32
    %30 = vector.broadcast %29 : i1 to vector<1x512xi1>
    %31 = vector.broadcast %30 : vector<1x512xi1> to vector<1x512xi1>
    %32 = arith.xori %28, %31 : vector<1x512xi1>
    %33 = arith.andi %32, %26 : vector<1x512xi1>
    %34 = vector.broadcast %22 : i32 to vector<1x512xi32>
    %35 = arith.addi %24, %34 : vector<1x512xi32>
    %36 = arith.select %33, %35, %24 : vector<1x512xi1>, vector<1x512xi32>
    %c16_i32_14 = arith.constant 16 : i32
    %37 = vector.broadcast %c16_i32_14 : i32 to vector<1x512xi32>
    %38 = arith.cmpi sge, %20, %37 : vector<1x512xi32>
    %39 = arith.extui %38 : vector<1x512xi1> to vector<1x512xi32>
    %40 = arith.sitofp %39 : vector<1x512xi32> to vector<1x512xf32>
    %c240_i32 = arith.constant 240 : i32
    %41 = vector.broadcast %c240_i32 : i32 to vector<1x512xi32>
    %42 = arith.cmpi slt, %20, %41 : vector<1x512xi32>
    %43 = arith.extui %42 : vector<1x512xi1> to vector<1x512xi32>
    %44 = arith.sitofp %43 : vector<1x512xi32> to vector<1x512xf32>
    %c1_i32_15 = arith.constant 1 : i32
    %45 = vector.broadcast %c1_i32_15 : i32 to vector<1x512xi32>
    %46 = arith.cmpi sge, %36, %45 : vector<1x512xi32>
    %47 = arith.extui %46 : vector<1x512xi1> to vector<1x512xi32>
    %48 = arith.sitofp %47 : vector<1x512xi32> to vector<1x512xf32>
    %c14_i32 = arith.constant 14 : i32
    %49 = vector.broadcast %c14_i32 : i32 to vector<1x512xi32>
    %50 = arith.cmpi sle, %36, %49 : vector<1x512xi32>
    %51 = arith.extui %50 : vector<1x512xi1> to vector<1x512xi32>
    %52 = arith.sitofp %51 : vector<1x512xi32> to vector<1x512xf32>
    %53 = arith.mulf %40, %48 : vector<1x512xf32>
    %54 = arith.mulf %40, %52 : vector<1x512xf32>
    %55 = arith.mulf %44, %48 : vector<1x512xf32>
    %56 = arith.mulf %44, %52 : vector<1x512xf32>
    %cst = arith.constant 0.000000e+00 : f32
    %57 = vector.broadcast %cst : f32 to vector<4x17xf32>
    %58 = vector.extract_strided_slice %3 {offsets = [0, 0], sizes = [4, 495], strides = [1, 1]} : vector<4x512xf32> to vector<4x495xf32>
    %59 = tpu.concatenate %57, %58 in 1 : vector<4x17xf32>, vector<4x495xf32> -> vector<4x512xf32>
    %60 = vector.broadcast %53 : vector<1x512xf32> to vector<4x512xf32>
    %61 = arith.mulf %59, %60 : vector<4x512xf32>
    %62 = vector.extract_strided_slice %57 {offsets = [0, 0], sizes = [4, 16], strides = [1, 1]} : vector<4x17xf32> to vector<4x16xf32>
    %63 = vector.extract_strided_slice %3 {offsets = [0, 0], sizes = [4, 496], strides = [1, 1]} : vector<4x512xf32> to vector<4x496xf32>
    %64 = tpu.concatenate %62, %63 in 1 : vector<4x16xf32>, vector<4x496xf32> -> vector<4x512xf32>
    %65 = vector.broadcast %40 : vector<1x512xf32> to vector<4x512xf32>
    %66 = arith.mulf %64, %65 : vector<4x512xf32>
    %67 = vector.extract_strided_slice %57 {offsets = [0, 0], sizes = [4, 15], strides = [1, 1]} : vector<4x17xf32> to vector<4x15xf32>
    %68 = vector.extract_strided_slice %3 {offsets = [0, 0], sizes = [4, 497], strides = [1, 1]} : vector<4x512xf32> to vector<4x497xf32>
    %69 = tpu.concatenate %67, %68 in 1 : vector<4x15xf32>, vector<4x497xf32> -> vector<4x512xf32>
    %70 = vector.broadcast %54 : vector<1x512xf32> to vector<4x512xf32>
    %71 = arith.mulf %69, %70 : vector<4x512xf32>
    %72 = vector.extract_strided_slice %57 {offsets = [0, 0], sizes = [4, 1], strides = [1, 1]} : vector<4x17xf32> to vector<4x1xf32>
    %73 = vector.extract_strided_slice %3 {offsets = [0, 0], sizes = [4, 511], strides = [1, 1]} : vector<4x512xf32> to vector<4x511xf32>
    %74 = tpu.concatenate %72, %73 in 1 : vector<4x1xf32>, vector<4x511xf32> -> vector<4x512xf32>
    %75 = vector.broadcast %48 : vector<1x512xf32> to vector<4x512xf32>
    %76 = arith.mulf %74, %75 : vector<4x512xf32>
    %77 = vector.extract_strided_slice %3 {offsets = [0, 1], sizes = [4, 511], strides = [1, 1]} : vector<4x512xf32> to vector<4x511xf32>
    %78 = vector.extract_strided_slice %57 {offsets = [0, 0], sizes = [4, 1], strides = [1, 1]} : vector<4x17xf32> to vector<4x1xf32>
    %79 = tpu.concatenate %77, %78 in 1 : vector<4x511xf32>, vector<4x1xf32> -> vector<4x512xf32>
    %80 = vector.broadcast %52 : vector<1x512xf32> to vector<4x512xf32>
    %81 = arith.mulf %79, %80 : vector<4x512xf32>
    %82 = vector.extract_strided_slice %3 {offsets = [0, 15], sizes = [4, 497], strides = [1, 1]} : vector<4x512xf32> to vector<4x497xf32>
    %83 = vector.extract_strided_slice %57 {offsets = [0, 0], sizes = [4, 15], strides = [1, 1]} : vector<4x17xf32> to vector<4x15xf32>
    %84 = tpu.concatenate %82, %83 in 1 : vector<4x497xf32>, vector<4x15xf32> -> vector<4x512xf32>
    %85 = vector.broadcast %55 : vector<1x512xf32> to vector<4x512xf32>
    %86 = arith.mulf %84, %85 : vector<4x512xf32>
    %87 = vector.extract_strided_slice %3 {offsets = [0, 16], sizes = [4, 496], strides = [1, 1]} : vector<4x512xf32> to vector<4x496xf32>
    %88 = vector.extract_strided_slice %57 {offsets = [0, 0], sizes = [4, 16], strides = [1, 1]} : vector<4x17xf32> to vector<4x16xf32>
    %89 = tpu.concatenate %87, %88 in 1 : vector<4x496xf32>, vector<4x16xf32> -> vector<4x512xf32>
    %90 = vector.broadcast %44 : vector<1x512xf32> to vector<4x512xf32>
    %91 = arith.mulf %89, %90 : vector<4x512xf32>
    %92 = vector.extract_strided_slice %3 {offsets = [0, 17], sizes = [4, 495], strides = [1, 1]} : vector<4x512xf32> to vector<4x495xf32>
    %93 = tpu.concatenate %92, %57 in 1 : vector<4x495xf32>, vector<4x17xf32> -> vector<4x512xf32>
    %94 = vector.broadcast %56 : vector<1x512xf32> to vector<4x512xf32>
    %95 = arith.mulf %93, %94 : vector<4x512xf32>
    %96 = tpu.concatenate %61, %66, %71, %76, %3, %81, %86, %91, %95 in 0 : vector<4x512xf32>, vector<4x512xf32>, vector<4x512xf32>, vector<4x512xf32>, vector<4x512xf32>, vector<4x512xf32>, vector<4x512xf32>, vector<4x512xf32>, vector<4x512xf32> -> vector<36x512xf32>
    %cst_16 = arith.constant dense<0.000000e+00> : vector<4x512xf32>
    %97 = tpu.matmul %0, %96, %cst_16 {dimension_numbers = #tpu.dot_dimension_numbers<[1], [0], [0], [1], [0, 0, 1, 1], [], []>} : vector<4x36xf32>, vector<36x512xf32>, vector<4x512xf32> -> vector<4x512xf32>
    %cst_17 = arith.constant dense<0.000000e+00> : vector<4xf32>
    %98 = vector.multi_reduction <add>, %97, %cst_17 [1] : vector<4x512xf32> to vector<4xf32>
    %99 = vector.shape_cast %98 : vector<4xf32> to vector<4x1xf32>
    %cst_18 = arith.constant 0.001953125 : f32
    %100 = vector.broadcast %cst_18 : f32 to vector<4x1xf32>
    %101 = arith.mulf %99, %100 : vector<4x1xf32>
    %102 = vector.broadcast %101 : vector<4x1xf32> to vector<4x512xf32>
    %103 = arith.subf %97, %102 : vector<4x512xf32>
    %104 = arith.mulf %103, %103 : vector<4x512xf32>
    %cst_19 = arith.constant dense<0.000000e+00> : vector<4xf32>
    %105 = vector.multi_reduction <add>, %104, %cst_19 [1] : vector<4x512xf32> to vector<4xf32>
    %106 = vector.shape_cast %105 : vector<4xf32> to vector<4x1xf32>
    %cst_20 = arith.constant 0.001953125 : f32
    %107 = vector.broadcast %cst_20 : f32 to vector<4x1xf32>
    %108 = arith.mulf %106, %107 : vector<4x1xf32>
    %cst_21 = arith.constant 9.99999974E-6 : f32
    %109 = vector.broadcast %cst_21 : f32 to vector<4x1xf32>
    %110 = arith.addf %108, %109 : vector<4x1xf32>
    %111 = math.rsqrt %110 : vector<4x1xf32>
    %112 = arith.mulf %1, %111 : vector<4x1xf32>
    %113 = vector.broadcast %112 : vector<4x1xf32> to vector<4x512xf32>
    %114 = arith.mulf %103, %113 : vector<4x512xf32>
    %115 = vector.broadcast %2 : vector<4x1xf32> to vector<4x512xf32>
    %116 = arith.addf %114, %115 : vector<4x512xf32>
    %cst_22 = arith.constant 0.000000e+00 : f32
    %117 = vector.broadcast %cst_22 : f32 to vector<4x512xf32>
    %118 = arith.maximumf %116, %117 : vector<4x512xf32>
    %119 = arith.addf %3, %118 : vector<4x512xf32>
    %120 = vector.extract_strided_slice %119 {offsets = [0, 0], sizes = [4, 495], strides = [1, 1]} : vector<4x512xf32> to vector<4x495xf32>
    %121 = tpu.concatenate %57, %120 in 1 : vector<4x17xf32>, vector<4x495xf32> -> vector<4x512xf32>
    %122 = vector.broadcast %53 : vector<1x512xf32> to vector<4x512xf32>
    %123 = arith.mulf %121, %122 : vector<4x512xf32>
    %124 = vector.extract_strided_slice %57 {offsets = [0, 0], sizes = [4, 16], strides = [1, 1]} : vector<4x17xf32> to vector<4x16xf32>
    %125 = vector.extract_strided_slice %119 {offsets = [0, 0], sizes = [4, 496], strides = [1, 1]} : vector<4x512xf32> to vector<4x496xf32>
    %126 = tpu.concatenate %124, %125 in 1 : vector<4x16xf32>, vector<4x496xf32> -> vector<4x512xf32>
    %127 = vector.broadcast %40 : vector<1x512xf32> to vector<4x512xf32>
    %128 = arith.mulf %126, %127 : vector<4x512xf32>
    %129 = vector.extract_strided_slice %57 {offsets = [0, 0], sizes = [4, 15], strides = [1, 1]} : vector<4x17xf32> to vector<4x15xf32>
    %130 = vector.extract_strided_slice %119 {offsets = [0, 0], sizes = [4, 497], strides = [1, 1]} : vector<4x512xf32> to vector<4x497xf32>
    %131 = tpu.concatenate %129, %130 in 1 : vector<4x15xf32>, vector<4x497xf32> -> vector<4x512xf32>
    %132 = vector.broadcast %54 : vector<1x512xf32> to vector<4x512xf32>
    %133 = arith.mulf %131, %132 : vector<4x512xf32>
    %134 = vector.extract_strided_slice %57 {offsets = [0, 0], sizes = [4, 1], strides = [1, 1]} : vector<4x17xf32> to vector<4x1xf32>
    %135 = vector.extract_strided_slice %119 {offsets = [0, 0], sizes = [4, 511], strides = [1, 1]} : vector<4x512xf32> to vector<4x511xf32>
    %136 = tpu.concatenate %134, %135 in 1 : vector<4x1xf32>, vector<4x511xf32> -> vector<4x512xf32>
    %137 = vector.broadcast %48 : vector<1x512xf32> to vector<4x512xf32>
    %138 = arith.mulf %136, %137 : vector<4x512xf32>
    %139 = vector.extract_strided_slice %119 {offsets = [0, 1], sizes = [4, 511], strides = [1, 1]} : vector<4x512xf32> to vector<4x511xf32>
    %140 = vector.extract_strided_slice %57 {offsets = [0, 0], sizes = [4, 1], strides = [1, 1]} : vector<4x17xf32> to vector<4x1xf32>
    %141 = tpu.concatenate %139, %140 in 1 : vector<4x511xf32>, vector<4x1xf32> -> vector<4x512xf32>
    %142 = vector.broadcast %52 : vector<1x512xf32> to vector<4x512xf32>
    %143 = arith.mulf %141, %142 : vector<4x512xf32>
    %144 = vector.extract_strided_slice %119 {offsets = [0, 15], sizes = [4, 497], strides = [1, 1]} : vector<4x512xf32> to vector<4x497xf32>
    %145 = vector.extract_strided_slice %57 {offsets = [0, 0], sizes = [4, 15], strides = [1, 1]} : vector<4x17xf32> to vector<4x15xf32>
    %146 = tpu.concatenate %144, %145 in 1 : vector<4x497xf32>, vector<4x15xf32> -> vector<4x512xf32>
    %147 = vector.broadcast %55 : vector<1x512xf32> to vector<4x512xf32>
    %148 = arith.mulf %146, %147 : vector<4x512xf32>
    %149 = vector.extract_strided_slice %119 {offsets = [0, 16], sizes = [4, 496], strides = [1, 1]} : vector<4x512xf32> to vector<4x496xf32>
    %150 = vector.extract_strided_slice %57 {offsets = [0, 0], sizes = [4, 16], strides = [1, 1]} : vector<4x17xf32> to vector<4x16xf32>
    %151 = tpu.concatenate %149, %150 in 1 : vector<4x496xf32>, vector<4x16xf32> -> vector<4x512xf32>
    %152 = vector.broadcast %44 : vector<1x512xf32> to vector<4x512xf32>
    %153 = arith.mulf %151, %152 : vector<4x512xf32>
    %154 = vector.extract_strided_slice %119 {offsets = [0, 17], sizes = [4, 495], strides = [1, 1]} : vector<4x512xf32> to vector<4x495xf32>
    %155 = tpu.concatenate %154, %57 in 1 : vector<4x495xf32>, vector<4x17xf32> -> vector<4x512xf32>
    %156 = vector.broadcast %56 : vector<1x512xf32> to vector<4x512xf32>
    %157 = arith.mulf %155, %156 : vector<4x512xf32>
    %158 = tpu.concatenate %123, %128, %133, %138, %119, %143, %148, %153, %157 in 0 : vector<4x512xf32>, vector<4x512xf32>, vector<4x512xf32>, vector<4x512xf32>, vector<4x512xf32>, vector<4x512xf32>, vector<4x512xf32>, vector<4x512xf32>, vector<4x512xf32> -> vector<36x512xf32>
    %cst_23 = arith.constant dense<0.000000e+00> : vector<4x512xf32>
    %159 = tpu.matmul %0, %158, %cst_23 {dimension_numbers = #tpu.dot_dimension_numbers<[1], [0], [0], [1], [0, 0, 1, 1], [], []>} : vector<4x36xf32>, vector<36x512xf32>, vector<4x512xf32> -> vector<4x512xf32>
    %cst_24 = arith.constant dense<0.000000e+00> : vector<4xf32>
    %160 = vector.multi_reduction <add>, %159, %cst_24 [1] : vector<4x512xf32> to vector<4xf32>
    %161 = vector.shape_cast %160 : vector<4xf32> to vector<4x1xf32>
    %cst_25 = arith.constant 0.001953125 : f32
    %162 = vector.broadcast %cst_25 : f32 to vector<4x1xf32>
    %163 = arith.mulf %161, %162 : vector<4x1xf32>
    %164 = vector.broadcast %163 : vector<4x1xf32> to vector<4x512xf32>
    %165 = arith.subf %159, %164 : vector<4x512xf32>
    %166 = arith.mulf %165, %165 : vector<4x512xf32>
    %cst_26 = arith.constant dense<0.000000e+00> : vector<4xf32>
    %167 = vector.multi_reduction <add>, %166, %cst_26 [1] : vector<4x512xf32> to vector<4xf32>
    %168 = vector.shape_cast %167 : vector<4xf32> to vector<4x1xf32>
    %cst_27 = arith.constant 0.001953125 : f32
    %169 = vector.broadcast %cst_27 : f32 to vector<4x1xf32>
    %170 = arith.mulf %168, %169 : vector<4x1xf32>
    %cst_28 = arith.constant 9.99999974E-6 : f32
    %171 = vector.broadcast %cst_28 : f32 to vector<4x1xf32>
    %172 = arith.addf %170, %171 : vector<4x1xf32>
    %173 = math.rsqrt %172 : vector<4x1xf32>
    %174 = arith.mulf %1, %173 : vector<4x1xf32>
    %175 = vector.broadcast %174 : vector<4x1xf32> to vector<4x512xf32>
    %176 = arith.mulf %165, %175 : vector<4x512xf32>
    %177 = vector.broadcast %2 : vector<4x1xf32> to vector<4x512xf32>
    %178 = arith.addf %176, %177 : vector<4x512xf32>
    %cst_29 = arith.constant 0.000000e+00 : f32
    %179 = vector.broadcast %cst_29 : f32 to vector<4x512xf32>
    %180 = arith.maximumf %178, %179 : vector<4x512xf32>
    %181 = arith.addf %3, %180 : vector<4x512xf32>
    %182 = vector.extract_strided_slice %181 {offsets = [0, 0], sizes = [4, 495], strides = [1, 1]} : vector<4x512xf32> to vector<4x495xf32>
    %183 = tpu.concatenate %57, %182 in 1 : vector<4x17xf32>, vector<4x495xf32> -> vector<4x512xf32>
    %184 = vector.broadcast %53 : vector<1x512xf32> to vector<4x512xf32>
    %185 = arith.mulf %183, %184 : vector<4x512xf32>
    %186 = vector.extract_strided_slice %57 {offsets = [0, 0], sizes = [4, 16], strides = [1, 1]} : vector<4x17xf32> to vector<4x16xf32>
    %187 = vector.extract_strided_slice %181 {offsets = [0, 0], sizes = [4, 496], strides = [1, 1]} : vector<4x512xf32> to vector<4x496xf32>
    %188 = tpu.concatenate %186, %187 in 1 : vector<4x16xf32>, vector<4x496xf32> -> vector<4x512xf32>
    %189 = vector.broadcast %40 : vector<1x512xf32> to vector<4x512xf32>
    %190 = arith.mulf %188, %189 : vector<4x512xf32>
    %191 = vector.extract_strided_slice %57 {offsets = [0, 0], sizes = [4, 15], strides = [1, 1]} : vector<4x17xf32> to vector<4x15xf32>
    %192 = vector.extract_strided_slice %181 {offsets = [0, 0], sizes = [4, 497], strides = [1, 1]} : vector<4x512xf32> to vector<4x497xf32>
    %193 = tpu.concatenate %191, %192 in 1 : vector<4x15xf32>, vector<4x497xf32> -> vector<4x512xf32>
    %194 = vector.broadcast %54 : vector<1x512xf32> to vector<4x512xf32>
    %195 = arith.mulf %193, %194 : vector<4x512xf32>
    %196 = vector.extract_strided_slice %57 {offsets = [0, 0], sizes = [4, 1], strides = [1, 1]} : vector<4x17xf32> to vector<4x1xf32>
    %197 = vector.extract_strided_slice %181 {offsets = [0, 0], sizes = [4, 511], strides = [1, 1]} : vector<4x512xf32> to vector<4x511xf32>
    %198 = tpu.concatenate %196, %197 in 1 : vector<4x1xf32>, vector<4x511xf32> -> vector<4x512xf32>
    %199 = vector.broadcast %48 : vector<1x512xf32> to vector<4x512xf32>
    %200 = arith.mulf %198, %199 : vector<4x512xf32>
    %201 = vector.extract_strided_slice %181 {offsets = [0, 1], sizes = [4, 511], strides = [1, 1]} : vector<4x512xf32> to vector<4x511xf32>
    %202 = vector.extract_strided_slice %57 {offsets = [0, 0], sizes = [4, 1], strides = [1, 1]} : vector<4x17xf32> to vector<4x1xf32>
    %203 = tpu.concatenate %201, %202 in 1 : vector<4x511xf32>, vector<4x1xf32> -> vector<4x512xf32>
    %204 = vector.broadcast %52 : vector<1x512xf32> to vector<4x512xf32>
    %205 = arith.mulf %203, %204 : vector<4x512xf32>
    %206 = vector.extract_strided_slice %181 {offsets = [0, 15], sizes = [4, 497], strides = [1, 1]} : vector<4x512xf32> to vector<4x497xf32>
    %207 = vector.extract_strided_slice %57 {offsets = [0, 0], sizes = [4, 15], strides = [1, 1]} : vector<4x17xf32> to vector<4x15xf32>
    %208 = tpu.concatenate %206, %207 in 1 : vector<4x497xf32>, vector<4x15xf32> -> vector<4x512xf32>
    %209 = vector.broadcast %55 : vector<1x512xf32> to vector<4x512xf32>
    %210 = arith.mulf %208, %209 : vector<4x512xf32>
    %211 = vector.extract_strided_slice %181 {offsets = [0, 16], sizes = [4, 496], strides = [1, 1]} : vector<4x512xf32> to vector<4x496xf32>
    %212 = vector.extract_strided_slice %57 {offsets = [0, 0], sizes = [4, 16], strides = [1, 1]} : vector<4x17xf32> to vector<4x16xf32>
    %213 = tpu.concatenate %211, %212 in 1 : vector<4x496xf32>, vector<4x16xf32> -> vector<4x512xf32>
    %214 = vector.broadcast %44 : vector<1x512xf32> to vector<4x512xf32>
    %215 = arith.mulf %213, %214 : vector<4x512xf32>
    %216 = vector.extract_strided_slice %181 {offsets = [0, 17], sizes = [4, 495], strides = [1, 1]} : vector<4x512xf32> to vector<4x495xf32>
    %217 = tpu.concatenate %216, %57 in 1 : vector<4x495xf32>, vector<4x17xf32> -> vector<4x512xf32>
    %218 = vector.broadcast %56 : vector<1x512xf32> to vector<4x512xf32>
    %219 = arith.mulf %217, %218 : vector<4x512xf32>
    %220 = tpu.concatenate %185, %190, %195, %200, %181, %205, %210, %215, %219 in 0 : vector<4x512xf32>, vector<4x512xf32>, vector<4x512xf32>, vector<4x512xf32>, vector<4x512xf32>, vector<4x512xf32>, vector<4x512xf32>, vector<4x512xf32>, vector<4x512xf32> -> vector<36x512xf32>
    %cst_30 = arith.constant dense<0.000000e+00> : vector<4x512xf32>
    %221 = tpu.matmul %0, %220, %cst_30 {dimension_numbers = #tpu.dot_dimension_numbers<[1], [0], [0], [1], [0, 0, 1, 1], [], []>} : vector<4x36xf32>, vector<36x512xf32>, vector<4x512xf32> -> vector<4x512xf32>
    %cst_31 = arith.constant dense<0.000000e+00> : vector<4xf32>
    %222 = vector.multi_reduction <add>, %221, %cst_31 [1] : vector<4x512xf32> to vector<4xf32>
    %223 = vector.shape_cast %222 : vector<4xf32> to vector<4x1xf32>
    %cst_32 = arith.constant 0.001953125 : f32
    %224 = vector.broadcast %cst_32 : f32 to vector<4x1xf32>
    %225 = arith.mulf %223, %224 : vector<4x1xf32>
    %226 = vector.broadcast %225 : vector<4x1xf32> to vector<4x512xf32>
    %227 = arith.subf %221, %226 : vector<4x512xf32>
    %228 = arith.mulf %227, %227 : vector<4x512xf32>
    %cst_33 = arith.constant dense<0.000000e+00> : vector<4xf32>
    %229 = vector.multi_reduction <add>, %228, %cst_33 [1] : vector<4x512xf32> to vector<4xf32>
    %230 = vector.shape_cast %229 : vector<4xf32> to vector<4x1xf32>
    %cst_34 = arith.constant 0.001953125 : f32
    %231 = vector.broadcast %cst_34 : f32 to vector<4x1xf32>
    %232 = arith.mulf %230, %231 : vector<4x1xf32>
    %cst_35 = arith.constant 9.99999974E-6 : f32
    %233 = vector.broadcast %cst_35 : f32 to vector<4x1xf32>
    %234 = arith.addf %232, %233 : vector<4x1xf32>
    %235 = math.rsqrt %234 : vector<4x1xf32>
    %236 = arith.mulf %1, %235 : vector<4x1xf32>
    %237 = vector.broadcast %236 : vector<4x1xf32> to vector<4x512xf32>
    %238 = arith.mulf %227, %237 : vector<4x512xf32>
    %239 = vector.broadcast %2 : vector<4x1xf32> to vector<4x512xf32>
    %240 = arith.addf %238, %239 : vector<4x512xf32>
    %cst_36 = arith.constant 0.000000e+00 : f32
    %241 = vector.broadcast %cst_36 : f32 to vector<4x512xf32>
    %242 = arith.maximumf %240, %241 : vector<4x512xf32>
    %c0_37 = arith.constant 0 : index
    %c0_38 = arith.constant 0 : index
    %243 = vector.load %arg4[%c0_37, %c0_38] : memref<4x512xf32, #tpu.memory_space<vmem>>, vector<4x512xf32>
    tpu.vector_store %arg4[%c0_37, %c0_38], %242 {strides = array<i32>} : memref<4x512xf32, #tpu.memory_space<vmem>>, vector<4x512xf32>,
    return
  }
  func.func @transform_0(%arg0: i32) -> (i32, i32) {
    %c0_i32 = arith.constant 0 : i32
    %c0_i32_0 = arith.constant 0 : i32
    %c0_i32_1 = arith.constant 0 : i32
    return %c0_i32, %c0_i32_0 : i32, i32
  }
  func.func @transform_1(%arg0: i32) -> (i32, i32) {
    %c0_i32 = arith.constant 0 : i32
    %c0_i32_0 = arith.constant 0 : i32
    %c0_i32_1 = arith.constant 0 : i32
    return %c0_i32, %c0_i32_0 : i32, i32
  }
  func.func @transform_2(%arg0: i32) -> (i32, i32) {
    %c0_i32 = arith.constant 0 : i32
    %c0_i32_0 = arith.constant 0 : i32
    %c0_i32_1 = arith.constant 0 : i32
    return %c0_i32, %c0_i32_0 : i32, i32
  }
  func.func @transform_3(%arg0: i32) -> (i32, i32) {
    %c0_i32 = arith.constant 0 : i32
    %c0_i32_0 = arith.constant 0 : i32
    %c0_i32_1 = arith.constant 0 : i32
    return %c0_i32, %c0_i32_0 : i32, i32
  }
}

</mosaic_0001>

<bundles_post_ra>
// kernel: recurrent_block.1
= control target key start
LH: loop header
LB: loop body
LE: loop exit
PB: predicated region body
PF: predicated region fallthrough
CT: control target
= control target key end

     0   :  { %v1585_v2 = vmov 0.0   ;;  %s1586_s16 = smov 111   ;;  %s1587_s17 = smov 112   ;;  %v18_v5 = vlaneseq  ;;  %vm342_vm2 = vcmask 908288   ;;  %vm405_vm3 = vcmask 1043456   ;;  %s2369_s2 = inlined_call_operand.vmem [shape: f32[4,512], index: 2, kind: input, shape index: {}]   ;;  %s2370_s0 = inlined_call_operand.vmem [shape: f32[4,36], index: 0, kind: input, shape index: {}]   ;;  %s2371_s1 = inlined_call_operand.vmem [shape: f32[4,2], index: 1, kind: input, shape index: {}]   ;;  %s2372_s3 = inlined_call_operand.vmem [shape: f32[4,512], index: 3, kind: output, shape index: {}]  }
   0x1   :  { %v1619_v0 = vld [vmem:[%s2369_s2 + $0x8] sm:$0xff]  ;;  %v1624_v1 = vld [vmem:[%s2369_s2] sm:$0xff]  ;;  %502 = vmatprep.mubr.f32.mxu0 %v1585_v2  ;;  %573 = vmatprep.mubr.f32.mxu1 %v1585_v2  ;;  %s1588_s18 = smov 127   ;;  %s1589_s19 = smov 113   ;;  %vm321_vm5 = vcmask 916480   ;;  %vm300_vm6 = vcmask 924672  }
   0x2   :  { %338 = vrot.lane.b32.xlu1 %v1619_v0, %s1586_s16  ;;  %317 = vrot.lane.b32.xlu0 %v1619_v0, %s1587_s17  ;;  %v1634_v3 = vcombine.high %v1624_v1, %v1624_v1  ;;  %s1590_s20 = smov 1   ;;  %v1662_v4 = vcombine.high %v1619_v0, %v1619_v0  ;;  %s1591_s21 = smov 15   ;;  %v1700_v6 = vand.u32 127, %v18_v5  ;;  %vm279_vm7 = vcmask 1039360  }
   0x3   :  { %s1592_s22 = smov 17   ;;  %s1593_s23 = smov 16   ;;  %vm258_vm13 = vcmask 7168  }
   0x4   :  { %v20_v7 = vadd.s32 128, %v1700_v6  ;;  %v75_v21 = vand.u32 15, %v1700_v6  ;;  %v22_v27 = vadd.s32 384, %v1700_v6  ;;  %v1746_v35 = vadd.s32 256, %v1700_v6 }
   0x5   :  { %v27_v44 = vand.u32 255, %v1700_v6 }
   0x6   :  { %336 = vrot.lane.b32.xlu1 %v1634_v3, %s1586_s16  ;;  %315 = vrot.lane.b32.xlu0 %v1634_v3, %s1587_s17  ;;  %v34_v8 = vand.u32 255, %v20_v7  ;;  %v82_v9 = vand.u32 15, %v20_v7  ;;  %vm155_vm8 = vcmp.le.s32.totalorder %v75_v21, 14  ;;  %vm143_vm9 = vcmp.ge.s32.totalorder %v75_v21, 1 }
   0x7   :  { %v1742_v31 = vsel %vm155_vm8, 1.0, %v1585_v2  ;;  %v48_v36 = vand.u32 255, %v22_v27  ;;  %v96_v37 = vand.u32 15, %v22_v27  ;;  %v1755_v45 = vsel %vm143_vm9, 1.0, %v1585_v2 }
   0x8   :  { %vm132_vm0 = vcmp.lt.s32.totalorder %v34_v8, 240  ;;  %vm156_vm1 = vcmp.le.s32.totalorder %v82_v9, 14  ;;  %vm144_vm4 = vcmp.ge.s32.totalorder %v82_v9, 1  ;;  %v89_v49 = vand.u32 15, %v1746_v35 }
   0x9   :  { %v1704_v10 = vsel %vm132_vm0, 1.0, %v1585_v2  ;;  %v1707_v11 = vsel %vm156_vm1, 1.0, %v1585_v2  ;;  %v1725_v22 = vsel %vm144_vm4, 1.0, %v1585_v2  ;;  %vm134_vm10 = vcmp.lt.s32.totalorder %v48_v36, 240 }
   0xa   :  { %275 = vrot.lane.b32.xlu1 %v1619_v0, %s1588_s18  ;;  %273 = vrot.lane.b32.xlu0 %v1634_v3, %s1588_s18  ;;  %v1715_v14 = vmul.f32 %v1707_v11, %v1704_v10  ;;  %v1733_v25 = vmul.f32 %v1725_v22, %v1704_v10  ;;  %vm158_vm11 = vcmp.le.s32.totalorder %v96_v37, 14  ;;  %vm119_vm12 = vcmp.ge.s32.totalorder %v27_v44, 16 }
   0xb   :  { %v1764_v56 = vsel %vm134_vm10, 1.0, %v1585_v2  ;;  %v1767_v57 = vsel %vm158_vm11, 1.0, %v1585_v2  ;;  %vm157_vm14 = vcmp.le.s32.totalorder %v89_v49, 14  ;;  %vm146_vm15 = vcmp.ge.s32.totalorder %v96_v37, 1 }
   0xc   :  { %v1775_v62 = vsel %vm119_vm12, 1.0, %v1585_v2  ;;  %v1781_v5 = vmul.f32 %v1767_v57, %v1764_v56  ;;  %v1790_v9 = vsel %vm146_vm15, 1.0, %v1585_v2  ;;  %vm237_vm0 = vcmask 121856  }
   0xd   :  { %vm145_vm1 = vcmp.ge.s32.totalorder %v89_v49, 1  ;;  %vm216_vm4 = vcmask 130048   ;;  %vm195_vm8 = vcmask 138240   ;;  %vm422_vm10 = vcmask 293888  }
   0xe   :  { %296 = vrot.lane.b32.xlu1 %v1619_v0, %s1589_s19  ;;  %294 = vrot.lane.b32.xlu0 %v1634_v3, %s1589_s19 }
  0x12   :  { %271 = vrot.lane.b32.xlu1 %v1624_v1, %s1588_s18  ;;  %334 = vrot.lane.b32.xlu0 %v1624_v1, %s1586_s16 }
  0x16   :  { %313 = vrot.lane.b32.xlu1 %v1624_v1, %s1587_s17  ;;  %292 = vrot.lane.b32.xlu0 %v1624_v1, %s1589_s19 }
  0x1a   :  { %252 = vrot.lane.b32.xlu1 %v1634_v3, %s1590_s20  ;;  %250 = vrot.lane.b32.xlu0 %v1624_v1, %s1590_s20 }
  0x1e   :  { %340 = vrot.lane.b32.xlu1 %v1662_v4, %s1586_s16  ;;  %319 = vrot.lane.b32.xlu0 %v1662_v4, %s1587_s17 }
  0x22   :  { %231 = vrot.lane.b32.xlu1 %v1634_v3, %s1591_s21  ;;  %229 = vrot.lane.b32.xlu0 %v1624_v1, %s1591_s21 }
  0x26   :  { %298 = vrot.lane.b32.xlu1 %v1662_v4, %s1589_s19  ;;  %277 = vrot.lane.b32.xlu0 %v1662_v4, %s1588_s18 }
  0x2a   :  { %187 = vrot.lane.b32.xlu1 %v1624_v1, %s1592_s22  ;;  %208 = vrot.lane.b32.xlu0 %v1624_v1, %s1593_s23 }
  0x2e   :  { %210 = vrot.lane.b32.xlu1 %v1634_v3, %s1593_s23  ;;  %189 = vrot.lane.b32.xlu0 %v1634_v3, %s1592_s22 }
  0x32   :  { %256 = vrot.lane.b32.xlu1 %v1662_v4, %s1590_s20  ;;  %254 = vrot.lane.b32.xlu0 %v1619_v0, %s1590_s20 }
  0x36   :  { %235 = vrot.lane.b32.xlu1 %v1662_v4, %s1591_s21  ;;  %233 = vrot.lane.b32.xlu0 %v1619_v0, %s1591_s21 }
  0x3a   :  { %191 = vrot.lane.b32.xlu1 %v1619_v0, %s1592_s22  ;;  %212 = vrot.lane.b32.xlu0 %v1619_v0, %s1593_s23 }
  0x3e   :  { %214 = vrot.lane.b32.xlu1 %v1662_v4, %s1593_s23  ;;  %193 = vrot.lane.b32.xlu0 %v1662_v4, %s1592_s22 }
  0x74   :  { %v1709_v12 = vpop.permute.xlu1 %338  ;;  %v1711_v13 = vpop.permute.xlu0 %317 }
  0x78   :  { %v337_v15 = vpop.permute.xlu1 %336  ;;  %v316_v16 = vpop.permute.xlu0 %315 }
  0x79   :  { %v344_v17 = vsel %vm342_vm2, %v337_v15, %v1709_v12  ;;  %v323_v23 = vsel %vm321_vm5, %v316_v16, %v1711_v13 }
  0x7a   :  { %v352_v18 = vmul.f32 %v344_v17, %v1715_v14  ;;  %v331_v29 = vmul.f32 %v1704_v10, %v323_v23 }
  0x7c   :  { %1543 = vmatprep.subr.msk.mxu0 %vm405_vm3, %v352_v18  ;;  %v1721_v19 = vpop.permute.xlu1 %275  ;;  %v274_v20 = vpop.permute.xlu0 %273  ;;  %v398_v41 = vrot.slane %v331_v29, 4 }
  0x7d   :  { %v281_v30 = vsel %vm279_vm7, %v274_v20, %v1721_v19 }
  0x7e   :  { %v289_v38 = vmul.f32 %v1707_v11, %v281_v30 }
  0x80   :  { %v1729_v24 = vpop.permute.xlu1 %296  ;;  %v295_v26 = vpop.permute.xlu0 %294  ;;  %v386_v50 = vrot.slane %v289_v38, 4 }
  0x81   :  { %v302_v28 = vsel %vm300_vm6, %v295_v26, %v1729_v24 }
  0x82   :  { %v310_v32 = vmul.f32 %v302_v28, %v1733_v25  ;;  %v415_v61 = vsel %vm405_vm3, %v1634_v3, %v386_v50  ;;  %v1787_v3 = vsel %vm157_vm14, 1.0, %v1585_v2 }
  0x84   :  { %v272_v33 = vpop.permute.xlu1 %271  ;;  %v335_v34 = vpop.permute.xlu0 %334  ;;  %v419_v48 = vsel %vm405_vm3, %v310_v32, %v398_v41 }
  0x85   :  { %v280_v39 = vsel %vm279_vm7, %v272_v33, %v274_v20  ;;  %v343_v40 = vsel %vm342_vm2, %v335_v34, %v337_v15  ;;  %v1816_v34 = vmul.f32 %v1790_v9, %v1764_v56 }
  0x86   :  { %v288_v42 = vmul.f32 %v1742_v31, %v280_v39  ;;  %v351_v43 = vmul.f32 %v1742_v31, %v343_v40  ;;  %v1821_v40 = vsel %vm145_vm1, 1.0, %v1585_v2 }
  0x88   :  { %v314_v46 = vpop.permute.xlu1 %313  ;;  %1544 = vmatpush1.msk.msra.mxu0 %vm405_vm3, %v351_v43  ;;  %v293_v47 = vpop.permute.xlu0 %292  ;;  %v385_v53 = vrot.slane %v288_v42, 4 }
  0x89   :  { %v322_v51 = vsel %vm321_vm5, %v314_v46, %v316_v16  ;;  %v301_v52 = vsel %vm300_vm6, %v293_v47, %v295_v26  ;;  %462 = vmatprep.subr.mxu0 %v419_v48  ;;  %v1794_v16 = vmul.f32 %v1742_v31, %v1775_v62 }
  0x8a   :  { %v397_v54 = vrot.slane %v322_v51, 4  ;;  %v309_v55 = vmul.f32 %v1755_v45, %v301_v52  ;;  %v414_v63 = vsel %vm405_vm3, %v1624_v1, %v385_v53 }
  0x8c   :  { %v1769_v58 = vpop.permute.xlu1 %252  ;;  %v251_v59 = vpop.permute.xlu0 %250  ;;  %v418_v60 = vsel %vm405_vm3, %v309_v55, %v397_v54  ;;  %v41_v55 = vand.u32 255, %v1746_v35 }
  0x8d   :  { %463 = vmatpush1.msra.mxu0 %v418_v60  ;;  %v259_v6 = vsel %vm258_vm13, %v251_v59, %v1769_v58  ;;  %v266_v7 = vsel %vm258_vm13, 0.0, %v251_v59 }
  0x8e   :  { %464 = vmatprep.subr.mxu0 %v415_v61  ;;  %v267_v21 = vmul.f32 %v1755_v45, %v266_v7  ;;  %v268_v23 = vmul.f32 %v1725_v22, %v259_v6  ;;  %vm121_vm9 = vcmp.ge.s32.totalorder %v41_v55, 16 }
  0x8f   :  { %465 = vmatpush1.msra.mxu0 %v414_v63 }
  0x90   :  { %v341_v8 = vpop.permute.xlu1 %340  ;;  %v320_v15 = vpop.permute.xlu0 %319  ;;  %v371_v36 = vrot.slane %v267_v21, 4  ;;  %v372_v37 = vrot.slane %v268_v23, 4 }
  0x91   :  { %v345_v17 = vsel %vm342_vm2, %v1709_v12, %v341_v8  ;;  %v350_v18 = vsel %vm342_vm2, %v341_v8, 0.0  ;;  %v329_v20 = vsel %vm321_vm5, %v320_v15, 0.0  ;;  %v324_v30 = vsel %vm321_vm5, %v1711_v13, %v320_v15 }
  0x92   :  { %v353_v26 = vmul.f32 %v1787_v3, %v345_v17  ;;  %v354_v27 = vmul.f32 %v350_v18, %v1781_v5  ;;  %v333_v28 = vmul.f32 %v1764_v56, %v329_v20  ;;  %v399_v13 = vrot.slane %v324_v30, 4 }
  0x93   :  { %v1846_v15 = vmul.f32 %v1755_v45, %v1775_v62 }
  0x94   :  { %1546 = vmatprep.subr.msk.mxu1 %vm405_vm3, %v354_v27  ;;  %v1806_v29 = vpop.permute.xlu1 %231  ;;  %v230_v12 = vpop.permute.xlu0 %229  ;;  %v400_v41 = vrot.slane %v333_v28, 4 }
  0x95   :  { %v238_v32 = vsel %vm237_vm0, %v230_v12, %v1806_v29  ;;  %v245_v33 = vsel %vm237_vm0, 0.0, %v230_v12  ;;  %1547 = vmatpush1.msk.msra.mxu1 %vm405_vm3, %v353_v26  ;;  %v1854_v12 = vsel %vm121_vm9, 1.0, %v1585_v2 }
  0x96   :  { %v246_v38 = vmul.f32 %v245_v33, %v1794_v16  ;;  %v247_v39 = vmul.f32 %v1707_v11, %v238_v32 }
  0x98   :  { %v299_v42 = vpop.permute.xlu1 %298  ;;  %v278_v43 = vpop.permute.xlu0 %277  ;;  %v411_v44 = vsel %vm405_vm3, %v247_v39, %v372_v37  ;;  %v410_v46 = vsel %vm405_vm3, %v246_v38, %v371_v36  ;;  %v1860_v36 = vld [vmem:[%s2370_s0] sm:$0xf] }
  0x99   :  { %v303_v47 = vsel %vm300_vm6, %v1729_v24, %v299_v42  ;;  %v308_v48 = vsel %vm300_vm6, %v299_v42, 0.0  ;;  %v282_v49 = vsel %vm279_vm7, %v1721_v19, %v278_v43  ;;  %v287_v50 = vsel %vm279_vm7, %v278_v43, 0.0  ;;  %466 = vmatprep.subr.mxu0 %v411_v44 }
  0x9a   :  { %v311_v51 = vmul.f32 %v1821_v40, %v303_v47  ;;  %v312_v52 = vmul.f32 %v308_v48, %v1816_v34  ;;  %v290_v53 = vmul.f32 %v1787_v3, %v282_v49  ;;  %v291_v54 = vmul.f32 %v1767_v57, %v287_v50  ;;  %467 = vmatpush1.msra.mxu0 %v410_v46 }
  0x9b   :  { %v1870_v42 = vmul.f32 %v1787_v3, %v1854_v12 }
  0x9c   :  { %v387_v24 = vrot.slane %v290_v53, 4  ;;  %v388_v59 = vrot.slane %v291_v54, 4  ;;  %v188_v60 = vpop.permute.xlu1 %187  ;;  %v209_v61 = vpop.permute.xlu0 %208  ;;  %v421_v19 = vsel %vm405_vm3, %v312_v52, %v400_v41  ;;  %v420_v63 = vsel %vm405_vm3, %v311_v51, %v399_v13 }
  0x9d   :  { %v224_v6 = vsel %vm216_vm4, 0.0, %v209_v61  ;;  %533 = vmatprep.subr.mxu1 %v421_v19  ;;  %v203_v17 = vsel %vm195_vm8, 0.0, %v188_v60 }
  0x9e   :  { %v225_v7 = vmul.f32 %v1775_v62, %v224_v6  ;;  %534 = vmatpush1.msra.mxu1 %v420_v63  ;;  %v417_v8 = vsel %vm405_vm3, %v1662_v4, %v388_v59  ;;  %v416_v35 = vsel %vm405_vm3, %v1619_v0, %v387_v24  ;;  %v204_v28 = vmul.f32 %v203_v17, %v1846_v15 }
  0x9f   :  { %535 = vmatprep.subr.mxu1 %v417_v8 }
  0xa0   :  { %v211_v18 = vpop.permute.xlu1 %210  ;;  %536 = vmatpush1.msra.mxu1 %v416_v35  ;;  %v190_v20 = vpop.permute.xlu0 %189  ;;  %v359_v21 = vrot.slane %v225_v7, 4 }
  0xa1   :  { %v217_v23 = vsel %vm216_vm4, %v209_v61, %v211_v18  ;;  %v196_v26 = vsel %vm195_vm8, %v188_v60, %v190_v20 }
  0xa2   :  { %v360_v4 = vrot.slane %v217_v23, 4  ;;  %v205_v27 = vmul.f32 %v1725_v22, %v196_v26  ;;  %v406_v39 = vsel %vm405_vm3, %v204_v28, %v359_v21 }
  0xa4   :  { %v257_v30 = vpop.permute.xlu1 %256  ;;  %v255_v32 = vpop.permute.xlu0 %254  ;;  %v407_v33 = vsel %vm405_vm3, %v205_v27, %v360_v4 }
  0xa5   :  { %v260_v37 = vsel %vm258_vm13, %v1769_v58, %v255_v32  ;;  %v261_v38 = vsel %vm258_vm13, %v255_v32, %v257_v30  ;;  %468 = vmatprep.subr.mxu0 %v407_v33 }
  0xa6   :  { %v269_v13 = vmul.f32 %v1821_v40, %v260_v37  ;;  %v270_v41 = vmul.f32 %v1790_v9, %v261_v38  ;;  %469 = vmatpush1.msra.mxu0 %v406_v39 }
  0xa7   :  { %1545 = vmatmul.mubr.msk.f32.vlgmr.msra.gmra.mxu0 %vm422_vm10, %v1860_v36 }
  0xa8   :  { %v236_v43 = vpop.permute.xlu1 %235  ;;  %v234_v44 = vpop.permute.xlu0 %233  ;;  %949 = vmatprep.mubr.f32.mxu0 %v1585_v2  ;;  %v373_v47 = vrot.slane %v269_v13, 4  ;;  %v374_v48 = vrot.slane %v270_v41, 4 }
  0xa9   :  { %v239_v58 = vsel %vm237_vm0, %v1806_v29, %v234_v44  ;;  %v240_v46 = vsel %vm237_vm0, %v234_v44, %v236_v43  ;;  %v1886_v29 = vmul.f32 %v1821_v40, %v1854_v12 }
  0xaa   :  { %v248_v49 = vmul.f32 %v239_v58, %v1870_v42  ;;  %v249_v50 = vmul.f32 %v1767_v57, %v240_v46 }
  0xac   :  { %v192_v51 = vpop.permute.xlu1 %191  ;;  %v213_v52 = vpop.permute.xlu0 %212  ;;  %v413_v53 = vsel %vm405_vm3, %v249_v50, %v374_v48  ;;  %v412_v54 = vsel %vm405_vm3, %v248_v49, %v373_v47 }
  0xad   :  { %v218_v55 = vsel %vm216_vm4, %v211_v18, %v213_v52  ;;  %537 = vmatprep.subr.mxu1 %v413_v53  ;;  %v197_v59 = vsel %vm195_vm8, %v190_v20, %v192_v51 }
  0xae   :  { %v227_v24 = vmul.f32 %v1854_v12, %v218_v55  ;;  %538 = vmatpush1.msra.mxu1 %v412_v54  ;;  %v206_v35 = vmul.f32 %v197_v59, %v1886_v29  ;;  %v1909_v59 = vld [vmem:[%s2371_s1] sm:$0xf] }
  0xb0   :  { %v215_v60 = vpop.permute.xlu1 %214  ;;  %v194_v61 = vpop.permute.xlu0 %193  ;;  %v361_v19 = vrot.slane %v227_v24, 4  ;;  %v1594_v24 = vmov 0  }
  0xb1   :  { %v219_v63 = vsel %vm216_vm4, %v213_v52, %v215_v60  ;;  %v198_v6 = vsel %vm195_vm8, %v192_v51, %v194_v61  ;;  %1572 = vset.pattern.permute.xlu0 %v1594_v24  ;;  %v1595_v60 = vmov 1  }
  0xb2   :  { %v362_v7 = vrot.slane %v219_v63, 4  ;;  %v207_v8 = vmul.f32 %v1790_v9, %v198_v6  ;;  %v408_v18 = vsel %vm405_vm3, %v206_v35, %v361_v19  ;;  %1573 = vset.pattern.permute.xlu1 %v1595_v60 }
  0xb4   :  { %v409_v17 = vsel %vm405_vm3, %v207_v8, %v362_v7 }
  0xb5   :  { %539 = vmatprep.subr.mxu1 %v409_v17 }
  0xb6   :  { %540 = vmatpush1.msra.mxu1 %v408_v18 }
  0xb7   :  { %1548 = vmatmul.mubr.msk.f32.vlgmr.msra.gmra.mxu1 %vm422_vm10, %v1860_v36 }
  0xb8   :  { %1020 = vmatprep.mubr.f32.mxu1 %v1585_v2 }
 0x167   :  { %v504_v20 = vpop.f32.mrf.mxu0 }
 0x168   :  { %v580_v23 = vsel %vm405_vm3, %v504_v20, 0.0 }
 0x169   :  { %v506_v21 = vpop.f32.mrf.mxu0 }
 0x16a   :  { %v581_v26 = vsel %vm405_vm3, %v506_v21, 0.0 }
 0x16b   :  { %v582_v4 = vadd.f32 %v581_v26, %v580_v23 }
 0x177   :  { %v575_v27 = vpop.f32.mrf.mxu1 }
 0x178   :  { %v583_v28 = vsel %vm405_vm3, %v575_v27, 0.0 }
 0x179   :  { %v584_v30 = vadd.f32 %v583_v28, %v582_v4  ;;  %v577_v32 = vpop.f32.mrf.mxu1 }
 0x17a   :  { %v585_v33 = vsel %vm405_vm3, %v577_v32, 0.0 }
 0x17b   :  { %v586_v37 = vadd.f32 %v585_v33, %v584_v30 }
 0x17d   :  { %587 = vadd.xlane.f32.xlu0 %v586_v37 }
 0x206   :  { %v588_v38 = vpop.xlane.xlu0 %587 }
 0x207   :  { %v589_v39 = vmul.f32 0.001953125, %v588_v38 }
 0x209   :  { %v590_v13 = vsub.f32 %v504_v20, %v589_v39  ;;  %v591_v41 = vsub.f32 %v506_v21, %v589_v39  ;;  %v592_v43 = vsub.f32 %v575_v27, %v589_v39  ;;  %v593_v44 = vsub.f32 %v577_v32, %v589_v39 }
 0x20b   :  { %v594_v58 = vmul.f32 %v590_v13, %v590_v13  ;;  %v595_v46 = vmul.f32 %v591_v41, %v591_v41  ;;  %v596_v47 = vmul.f32 %v592_v43, %v592_v43  ;;  %v597_v48 = vmul.f32 %v593_v44, %v593_v44 }
 0x20d   :  { %v598_v49 = vsel %vm405_vm3, %v594_v58, 0.0  ;;  %v599_v50 = vsel %vm405_vm3, %v595_v46, 0.0  ;;  %v601_v52 = vsel %vm405_vm3, %v596_v47, 0.0  ;;  %v603_v54 = vsel %vm405_vm3, %v597_v48, 0.0 }
 0x20e   :  { %v600_v51 = vadd.f32 %v599_v50, %v598_v49 }
 0x210   :  { %v602_v53 = vadd.f32 %v601_v52, %v600_v51 }
 0x212   :  { %v604_v55 = vadd.f32 %v603_v54, %v602_v53 }
 0x214   :  { %605 = vadd.xlane.f32.xlu1 %v604_v55 }
 0x225   :  { %622 = vperm.xlu1 %1573, %v1909_v59  }
 0x29d   :  { %v606_v61 = vpop.xlane.xlu1 %605 }
 0x29e   :  { %v607_v19 = vmul.f32 0.001953125, %v606_v61 }
 0x2a0   :  { %v608_v63 = vadd.f32 1e-05, %v607_v19 }
 0x2a1   :  { %v1913_v35 = vpop.permute.xlu1 %622 }
 0x2a2   :  { %1576 = vrsqrt.f32 %v608_v63 }
 0x2af   :  { %v1577_v6 = vpop.eup %1576 }
 0x2b0   :  { %v610_v7 = vmul.f32 %v1577_v6, %v1909_v59 }
 0x2b2   :  { %613 = vperm.xlu0 %1572, %v610_v7  }
 0x32d   :  { %v614_v8 = vpop.permute.xlu0 %613 }
 0x32e   :  { %v616_v17 = vmul.f32 %v614_v8, %v590_v13  ;;  %v617_v18 = vmul.f32 %v614_v8, %v591_v41  ;;  %v618_v20 = vmul.f32 %v614_v8, %v592_v43  ;;  %v619_v21 = vmul.f32 %v614_v8, %v593_v44 }
 0x330   :  { %v625_v23 = vadd.f32 %v1913_v35, %v616_v17  ;;  %v626_v26 = vadd.f32 %v1913_v35, %v617_v18  ;;  %v627_v4 = vadd.f32 %v1913_v35, %v618_v20  ;;  %v628_v27 = vadd.f32 %v1913_v35, %v619_v21 }
 0x332   :  { %v629_v28 = vmax.f32 %v625_v23, 0.0  ;;  %v630_v30 = vmax.f32 %v626_v26, 0.0  ;;  %v631_v32 = vmax.f32 %v627_v4, 0.0  ;;  %v632_v33 = vmax.f32 %v628_v27, 0.0 }
 0x334   :  { %v637_v37 = vcombine.low %v629_v28, %v630_v30  ;;  %v638_v38 = vcombine.low %v631_v32, %v632_v33 }
 0x336   :  { %v1920_v39 = vadd.f32 %v637_v37, %v1624_v1  ;;  %v1923_v13 = vadd.f32 %v638_v38, %v1619_v0 }
 0x338   :  { %771 = vrot.lane.b32.xlu1 %v1923_v13, %s1587_s17  ;;  %787 = vrot.lane.b32.xlu0 %v1920_v39, %s1586_s16  ;;  %v1959_v0 = vcombine.high %v1920_v39, %v1920_v39  ;;  %v1967_v1 = vcombine.high %v1923_v13, %v1923_v13 }
 0x33c   :  { %791 = vrot.lane.b32.xlu1 %v1923_v13, %s1586_s16  ;;  %747 = vrot.lane.b32.xlu0 %v1920_v39, %s1589_s19 }
 0x340   :  { %731 = vrot.lane.b32.xlu1 %v1923_v13, %s1588_s18  ;;  %707 = vrot.lane.b32.xlu0 %v1920_v39, %s1590_s20 }
 0x344   :  { %751 = vrot.lane.b32.xlu1 %v1923_v13, %s1589_s19  ;;  %687 = vrot.lane.b32.xlu0 %v1920_v39, %s1591_s21 }
 0x348   :  { %727 = vrot.lane.b32.xlu1 %v1920_v39, %s1588_s18  ;;  %667 = vrot.lane.b32.xlu0 %v1920_v39, %s1593_s23 }
 0x34c   :  { %767 = vrot.lane.b32.xlu1 %v1920_v39, %s1587_s17  ;;  %711 = vrot.lane.b32.xlu0 %v1923_v13, %s1590_s20 }
 0x350   :  { %647 = vrot.lane.b32.xlu1 %v1920_v39, %s1592_s22  ;;  %691 = vrot.lane.b32.xlu0 %v1923_v13, %s1591_s21 }
 0x354   :  { %651 = vrot.lane.b32.xlu1 %v1923_v13, %s1592_s22  ;;  %671 = vrot.lane.b32.xlu0 %v1923_v13, %s1593_s23 }
 0x358   :  { %749 = vrot.lane.b32.xlu0 %v1959_v0, %s1589_s19  ;;  %769 = vrot.lane.b32.xlu1 %v1959_v0, %s1587_s17 }
 0x35c   :  { %773 = vrot.lane.b32.xlu0 %v1967_v1, %s1587_s17  ;;  %789 = vrot.lane.b32.xlu1 %v1959_v0, %s1586_s16 }
 0x360   :  { %733 = vrot.lane.b32.xlu0 %v1967_v1, %s1588_s18  ;;  %729 = vrot.lane.b32.xlu1 %v1959_v0, %s1588_s18 }
 0x364   :  { %649 = vrot.lane.b32.xlu0 %v1959_v0, %s1592_s22  ;;  %709 = vrot.lane.b32.xlu1 %v1959_v0, %s1590_s20 }
 0x368   :  { %653 = vrot.lane.b32.xlu0 %v1967_v1, %s1592_s22  ;;  %793 = vrot.lane.b32.xlu1 %v1967_v1, %s1586_s16 }
 0x36c   :  { %689 = vrot.lane.b32.xlu1 %v1959_v0, %s1591_s21 }
 0x370   :  { %753 = vrot.lane.b32.xlu1 %v1967_v1, %s1589_s19 }
 0x374   :  { %669 = vrot.lane.b32.xlu1 %v1959_v0, %s1593_s23 }
 0x378   :  { %713 = vrot.lane.b32.xlu1 %v1967_v1, %s1590_s20 }
 0x37c   :  { %693 = vrot.lane.b32.xlu1 %v1967_v1, %s1591_s21 }
 0x380   :  { %673 = vrot.lane.b32.xlu1 %v1967_v1, %s1593_s23 }
 0x3aa   :  { %v1997_v41 = vpop.permute.xlu1 %771  ;;  %v788_v43 = vpop.permute.xlu0 %787 }
 0x3ae   :  { %v792_v44 = vpop.permute.xlu1 %791  ;;  %v748_v58 = vpop.permute.xlu0 %747 }
 0x3b2   :  { %v732_v46 = vpop.permute.xlu1 %731  ;;  %v708_v47 = vpop.permute.xlu0 %707 }
 0x3b6   :  { %v1999_v48 = vpop.permute.xlu1 %751  ;;  %v2001_v49 = vpop.permute.xlu0 %687 }
 0x3ba   :  { %v728_v50 = vpop.permute.xlu1 %727  ;;  %v2003_v51 = vpop.permute.xlu0 %667 }
 0x3be   :  { %v768_v52 = vpop.permute.xlu1 %767  ;;  %v2005_v53 = vpop.permute.xlu0 %711 }
 0x3c2   :  { %v2007_v54 = vpop.permute.xlu1 %647  ;;  %v2009_v55 = vpop.permute.xlu0 %691 }
 0x3c6   :  { %v2011_v24 = vpop.permute.xlu1 %651  ;;  %v2013_v60 = vpop.permute.xlu0 %671 }
 0x3ca   :  { %v750_v61 = vpop.permute.xlu0 %749  ;;  %v770_v19 = vpop.permute.xlu1 %769 }
 0x3cb   :  { %v776_v63 = vsel %vm321_vm5, %v770_v19, %v1997_v41  ;;  %v755_v7 = vsel %vm300_vm6, %v748_v58, %v750_v61  ;;  %v775_v8 = vsel %vm321_vm5, %v768_v52, %v770_v19  ;;  %v756_v17 = vsel %vm300_vm6, %v750_v61, %v1999_v48 }
 0x3cc   :  { %v784_v6 = vmul.f32 %v1704_v10, %v776_v63  ;;  %v763_v26 = vmul.f32 %v1755_v45, %v755_v7  ;;  %v849_v4 = vrot.slane %v775_v8, 4  ;;  %v764_v30 = vmul.f32 %v756_v17, %v1733_v25 }
 0x3ce   :  { %v790_v18 = vpop.permute.xlu1 %789  ;;  %v850_v20 = vrot.slane %v784_v6, 4  ;;  %v869_v61 = vsel %vm405_vm3, %v763_v26, %v849_v4 }
 0x3cf   :  { %v795_v21 = vsel %vm342_vm2, %v788_v43, %v790_v18  ;;  %v796_v23 = vsel %vm342_vm2, %v790_v18, %v792_v44  ;;  %v774_v43 = vpop.permute.xlu0 %773 }
 0x3d0   :  { %v803_v27 = vmul.f32 %v1742_v31, %v795_v21  ;;  %v804_v28 = vmul.f32 %v796_v23, %v1715_v14  ;;  %v870_v38 = vsel %vm405_vm3, %v764_v30, %v850_v20  ;;  %v702_v23 = vsel %vm237_vm0, 0.0, %v2001_v49 }
 0x3d1   :  { %v703_v30 = vmul.f32 %v702_v23, %v1794_v16 }
 0x3d2   :  { %1549 = vmatprep.subr.msk.mxu0 %vm405_vm3, %v804_v28  ;;  %v730_v32 = vpop.permute.xlu1 %729 }
 0x3d3   :  { %v735_v33 = vsel %vm279_vm7, %v728_v50, %v730_v32  ;;  %v736_v37 = vsel %vm279_vm7, %v730_v32, %v732_v46  ;;  %1550 = vmatpush1.msk.msra.mxu0 %vm405_vm3, %v803_v27  ;;  %v722_v50 = vsel %vm258_vm13, 0.0, %v708_v47  ;;  %v734_v18 = vpop.permute.xlu0 %733 }
 0x3d4   :  { %v743_v58 = vmul.f32 %v1742_v31, %v735_v33  ;;  %v744_v52 = vmul.f32 %v1707_v11, %v736_v37  ;;  %909 = vmatprep.subr.mxu0 %v870_v38  ;;  %v723_v21 = vmul.f32 %v1755_v45, %v722_v50  ;;  %v742_v28 = vsel %vm279_vm7, %v734_v18, 0.0 }
 0x3d5   :  { %910 = vmatpush1.msra.mxu0 %v869_v61  ;;  %v737_v32 = vsel %vm279_vm7, %v732_v46, %v734_v18  ;;  %v777_v37 = vsel %vm321_vm5, %v1997_v41, %v774_v43 }
 0x3d6   :  { %v837_v19 = vrot.slane %v743_v58, 4  ;;  %v838_v63 = vrot.slane %v744_v52, 4  ;;  %v2036_v6 = vpop.permute.xlu1 %709  ;;  %v746_v52 = vmul.f32 %v1767_v57, %v742_v28  ;;  %v745_v46 = vmul.f32 %v1787_v3, %v737_v32 }
 0x3d7   :  { %v715_v7 = vsel %vm258_vm13, %v708_v47, %v2036_v6  ;;  %v650_v50 = vpop.permute.xlu0 %649 }
 0x3d8   :  { %v866_v8 = vsel %vm405_vm3, %v1959_v0, %v838_v63  ;;  %v865_v17 = vsel %vm405_vm3, %v1920_v39, %v837_v19  ;;  %v724_v47 = vmul.f32 %v1725_v22, %v715_v7  ;;  %v782_v39 = vsel %vm321_vm5, %v774_v43, 0.0 }
 0x3d9   :  { %911 = vmatprep.subr.mxu0 %v866_v8  ;;  %v786_v58 = vmul.f32 %v1764_v56, %v782_v39  ;;  %v682_v63 = vsel %vm216_vm4, 0.0, %v2003_v51  ;;  %v662_v43 = vsel %vm195_vm8, 0.0, %v2007_v54  ;;  %v851_v8 = vrot.slane %v777_v37, 4 }
 0x3da   :  { %v794_v20 = vpop.permute.xlu1 %793  ;;  %912 = vmatpush1.msra.mxu0 %v865_v17  ;;  %v824_v61 = vrot.slane %v724_v47, 4  ;;  %v839_v47 = vrot.slane %v745_v46, 4  ;;  %v663_v28 = vmul.f32 %v662_v43, %v1846_v15 }
 0x3db   :  { %v797_v26 = vsel %vm342_vm2, %v792_v44, %v794_v20  ;;  %v802_v4 = vsel %vm342_vm2, %v794_v20, 0.0  ;;  %v823_v44 = vrot.slane %v723_v21, 4  ;;  %v852_v20 = vrot.slane %v786_v58, 4 }
 0x3dc   :  { %v805_v0 = vmul.f32 %v1787_v3, %v797_v26  ;;  %v806_v27 = vmul.f32 %v802_v4, %v1781_v5  ;;  %v840_v21 = vrot.slane %v746_v52, 4  ;;  %v683_v4 = vmul.f32 %v1775_v62, %v682_v63  ;;  %v654_v63 = vpop.permute.xlu0 %653 }
 0x3dd   :  { %v716_v58 = vsel %vm258_vm13, %v2036_v6, %v2005_v53 }
 0x3de   :  { %1552 = vmatprep.subr.msk.mxu1 %vm405_vm3, %v806_v27  ;;  %v690_v33 = vpop.permute.xlu1 %689  ;;  %v868_v37 = vsel %vm405_vm3, %v1967_v1, %v840_v21  ;;  %v725_v6 = vmul.f32 %v1821_v40, %v716_v58 }
 0x3df   :  { %v695_v38 = vsel %vm237_vm0, %v2001_v49, %v690_v33  ;;  %1553 = vmatpush1.msk.msra.mxu1 %vm405_vm3, %v805_v0  ;;  %v861_v49 = vsel %vm405_vm3, %v703_v30, %v823_v44  ;;  %v655_v0 = vsel %vm195_vm8, %v2007_v54, %v650_v50  ;;  %v867_v54 = vsel %vm405_vm3, %v1923_v13, %v839_v47 }
 0x3e0   :  { %v704_v19 = vmul.f32 %v1707_v11, %v695_v38  ;;  %v664_v32 = vmul.f32 %v1725_v22, %v655_v0  ;;  %v811_v38 = vrot.slane %v683_v4, 4  ;;  %v696_v1 = vsel %vm237_vm0, %v690_v33, %v2009_v55 }
 0x3e2   :  { %v754_v7 = vpop.permute.xlu1 %753  ;;  %v862_v41 = vsel %vm405_vm3, %v704_v19, %v824_v61  ;;  %v857_v19 = vsel %vm405_vm3, %v663_v28, %v811_v38 }
 0x3e3   :  { %v757_v17 = vsel %vm300_vm6, %v1999_v48, %v754_v7  ;;  %v762_v18 = vsel %vm300_vm6, %v754_v7, 0.0  ;;  %913 = vmatprep.subr.mxu0 %v862_v41 }
 0x3e4   :  { %v765_v23 = vmul.f32 %v1821_v40, %v757_v17  ;;  %v766_v26 = vmul.f32 %v762_v18, %v1816_v34  ;;  %914 = vmatpush1.msra.mxu0 %v861_v49  ;;  %v657_v17 = vsel %vm195_vm8, %v2011_v24, %v654_v63  ;;  %v656_v18 = vsel %vm195_vm8, %v650_v50, %v2011_v24 }
 0x3e5   :  { %v666_v4 = vmul.f32 %v1790_v9, %v657_v17  ;;  %v665_v0 = vmul.f32 %v656_v18, %v1886_v29 }
 0x3e6   :  { %v670_v27 = vpop.permute.xlu1 %669  ;;  %v872_v39 = vsel %vm405_vm3, %v766_v26, %v852_v20  ;;  %v871_v48 = vsel %vm405_vm3, %v765_v23, %v851_v8  ;;  %v825_v8 = vrot.slane %v725_v6, 4 }
 0x3e7   :  { %v675_v30 = vsel %vm216_vm4, %v2003_v51, %v670_v27  ;;  %980 = vmatprep.subr.mxu1 %v872_v39  ;;  %v676_v13 = vsel %vm216_vm4, %v670_v27, %v2013_v60 }
 0x3e8   :  { %v812_v44 = vrot.slane %v675_v30, 4  ;;  %981 = vmatpush1.msra.mxu1 %v871_v48  ;;  %v685_v41 = vmul.f32 %v1854_v12, %v676_v13 }
 0x3e9   :  { %982 = vmatprep.subr.mxu1 %v868_v37 }
 0x3ea   :  { %983 = vmatpush1.msra.mxu1 %v867_v54  ;;  %v714_v52 = vpop.permute.xlu1 %713  ;;  %v858_v51 = vsel %vm405_vm3, %v664_v32, %v812_v44  ;;  %v813_v23 = vrot.slane %v685_v41, 4 }
 0x3eb   :  { %v717_v61 = vsel %vm258_vm13, %v2005_v53, %v714_v52  ;;  %915 = vmatprep.subr.mxu0 %v858_v51  ;;  %v705_v53 = vmul.f32 %v696_v1, %v1870_v42 }
 0x3ec   :  { %v726_v46 = vmul.f32 %v1790_v9, %v717_v61  ;;  %916 = vmatpush1.msra.mxu0 %v857_v19  ;;  %v859_v24 = vsel %vm405_vm3, %v665_v0, %v813_v23 }
 0x3ed   :  { %1551 = vmatmul.mubr.msk.f32.vlgmr.msra.gmra.mxu0 %vm422_vm10, %v1860_v36 }
 0x3ee   :  { %v694_v7 = vpop.permute.xlu1 %693  ;;  %1391 = vmatprep.mubr.f32.mxu0 %v1585_v2  ;;  %v826_v49 = vrot.slane %v726_v46, 4 }
 0x3ef   :  { %v697_v33 = vsel %vm237_vm0, %v2009_v55, %v694_v7  ;;  %v863_v55 = vsel %vm405_vm3, %v705_v53, %v825_v8 }
 0x3f0   :  { %v706_v43 = vmul.f32 %v1767_v57, %v697_v33 }
 0x3f2   :  { %v674_v20 = vpop.permute.xlu1 %673  ;;  %v864_v21 = vsel %vm405_vm3, %v706_v43, %v826_v49 }
 0x3f3   :  { %v677_v26 = vsel %vm216_vm4, %v2013_v60, %v674_v20  ;;  %984 = vmatprep.subr.mxu1 %v864_v21 }
 0x3f4   :  { %v814_v47 = vrot.slane %v677_v26, 4  ;;  %985 = vmatpush1.msra.mxu1 %v863_v55 }
 0x3f6   :  { %v860_v27 = vsel %vm405_vm3, %v666_v4, %v814_v47 }
 0x3f7   :  { %986 = vmatprep.subr.mxu1 %v860_v27 }
 0x3f8   :  { %987 = vmatpush1.msra.mxu1 %v859_v24 }
 0x3f9   :  { %1554 = vmatmul.mubr.msk.f32.vlgmr.msra.gmra.mxu1 %vm422_vm10, %v1860_v36 }
 0x3fa   :  { %1462 = vmatprep.mubr.f32.mxu1 %v1585_v2 }
 0x4ad   :  { %v951_v60 = vpop.f32.mrf.mxu0 }
 0x4ae   :  { %v1027_v39 = vsel %vm405_vm3, %v951_v60, 0.0 }
 0x4af   :  { %v953_v50 = vpop.f32.mrf.mxu0 }
 0x4b0   :  { %v1028_v48 = vsel %vm405_vm3, %v953_v50, 0.0 }
 0x4b1   :  { %v1029_v28 = vadd.f32 %v1028_v48, %v1027_v39 }
 0x4b9   :  { %v1022_v30 = vpop.f32.mrf.mxu1 }
 0x4ba   :  { %v1030_v32 = vsel %vm405_vm3, %v1022_v30, 0.0 }
 0x4bb   :  { %v1031_v44 = vadd.f32 %v1030_v32, %v1029_v28  ;;  %v1024_v37 = vpop.f32.mrf.mxu1  ;;  %v1582_v32 = vld [vmem:[%s2369_s2] sm:$0xff] }
 0x4bc   :  { %v1032_v38 = vsel %vm405_vm3, %v1024_v37, 0.0 }
 0x4bd   :  { %v1033_v54 = vadd.f32 %v1032_v38, %v1031_v44 }
 0x4bf   :  { %1034 = vadd.xlane.f32.xlu0 %v1033_v54 }
 0x548   :  { %v1035_v58 = vpop.xlane.xlu0 %1034 }
 0x549   :  { %v1036_v36 = vmul.f32 0.001953125, %v1035_v58 }
 0x54b   :  { %v1037_v52 = vsub.f32 %v951_v60, %v1036_v36  ;;  %v1038_v2 = vsub.f32 %v953_v50, %v1036_v36  ;;  %v1039_v51 = vsub.f32 %v1022_v30, %v1036_v36  ;;  %v1040_v61 = vsub.f32 %v1024_v37, %v1036_v36  ;;  %v1583_v37 = vld [vmem:[%s2369_s2 + $0x8] sm:$0xff] }
 0x54d   :  { %v1041_v19 = vmul.f32 %v1037_v52, %v1037_v52  ;;  %v1042_v1 = vmul.f32 %v1038_v2, %v1038_v2  ;;  %v1043_v13 = vmul.f32 %v1039_v51, %v1039_v51  ;;  %v1044_v46 = vmul.f32 %v1040_v61, %v1040_v61 }
 0x54f   :  { %v1045_v6 = vsel %vm405_vm3, %v1041_v19, 0.0  ;;  %v1046_v63 = vsel %vm405_vm3, %v1042_v1, 0.0  ;;  %v1048_v53 = vsel %vm405_vm3, %v1043_v13, 0.0  ;;  %v1050_v33 = vsel %vm405_vm3, %v1044_v46, 0.0 }
 0x550   :  { %v1047_v7 = vadd.f32 %v1046_v63, %v1045_v6 }
 0x552   :  { %v1049_v41 = vadd.f32 %v1048_v53, %v1047_v7 }
 0x554   :  { %v1051_v49 = vadd.f32 %v1050_v33, %v1049_v41 }
 0x556   :  { %1052 = vadd.xlane.f32.xlu1 %v1051_v49 }
 0x5df   :  { %v1053_v43 = vpop.xlane.xlu1 %1052 }
 0x5e0   :  { %v1054_v8 = vmul.f32 0.001953125, %v1053_v43 }
 0x5e2   :  { %v1055_v17 = vadd.f32 1e-05, %v1054_v8 }
 0x5e4   :  { %1578 = vrsqrt.f32 %v1055_v17 }
 0x5f1   :  { %v1579_v18 = vpop.eup %1578 }
 0x5f2   :  { %v1057_v20 = vmul.f32 %v1579_v18, %v1909_v59 }
 0x5f4   :  { %1060 = vperm.xlu0 %1572, %v1057_v20  }
 0x66f   :  { %v1061_v21 = vpop.permute.xlu0 %1060 }
 0x670   :  { %v1063_v23 = vmul.f32 %v1061_v21, %v1037_v52  ;;  %v1064_v26 = vmul.f32 %v1061_v21, %v1038_v2  ;;  %v1065_v55 = vmul.f32 %v1061_v21, %v1039_v51  ;;  %v1066_v4 = vmul.f32 %v1061_v21, %v1040_v61 }
 0x672   :  { %v1067_v47 = vadd.f32 %v1063_v23, %v1913_v35  ;;  %v1068_v0 = vadd.f32 %v1064_v26, %v1913_v35  ;;  %v1069_v27 = vadd.f32 %v1065_v55, %v1913_v35  ;;  %v1070_v24 = vadd.f32 %v1066_v4, %v1913_v35 }
 0x674   :  { %v1071_v60 = vmax.f32 %v1067_v47, 0.0  ;;  %v1072_v50 = vmax.f32 %v1068_v0, 0.0  ;;  %v1073_v39 = vmax.f32 %v1069_v27, 0.0  ;;  %v1074_v48 = vmax.f32 %v1070_v24, 0.0 }
 0x676   :  { %v1079_v28 = vcombine.low %v1071_v60, %v1072_v50  ;;  %v1080_v30 = vcombine.low %v1073_v39, %v1074_v48 }
 0x678   :  { %v2143_v44 = vadd.f32 %v1582_v32, %v1079_v28  ;;  %v2148_v38 = vadd.f32 %v1583_v37, %v1080_v30 }
 0x67a   :  { %1213 = vrot.lane.b32.xlu0 %v2148_v38, %s1587_s17  ;;  %1229 = vrot.lane.b32.xlu1 %v2143_v44, %s1586_s16  ;;  %v2184_v54 = vcombine.high %v2143_v44, %v2143_v44  ;;  %v2192_v58 = vcombine.high %v2148_v38, %v2148_v38 }
 0x67e   :  { %1233 = vrot.lane.b32.xlu0 %v2148_v38, %s1586_s16  ;;  %1189 = vrot.lane.b32.xlu1 %v2143_v44, %s1589_s19 }
 0x682   :  { %1173 = vrot.lane.b32.xlu0 %v2148_v38, %s1588_s18  ;;  %1149 = vrot.lane.b32.xlu1 %v2143_v44, %s1590_s20 }
 0x686   :  { %1193 = vrot.lane.b32.xlu0 %v2148_v38, %s1589_s19  ;;  %1129 = vrot.lane.b32.xlu1 %v2143_v44, %s1591_s21 }
 0x68a   :  { %1169 = vrot.lane.b32.xlu0 %v2143_v44, %s1588_s18  ;;  %1109 = vrot.lane.b32.xlu1 %v2143_v44, %s1593_s23 }
 0x68e   :  { %1209 = vrot.lane.b32.xlu0 %v2143_v44, %s1587_s17  ;;  %1153 = vrot.lane.b32.xlu1 %v2148_v38, %s1590_s20 }
 0x692   :  { %1089 = vrot.lane.b32.xlu0 %v2143_v44, %s1592_s22  ;;  %1133 = vrot.lane.b32.xlu1 %v2148_v38, %s1591_s21 }
 0x696   :  { %1093 = vrot.lane.b32.xlu0 %v2148_v38, %s1592_s22  ;;  %1113 = vrot.lane.b32.xlu1 %v2148_v38, %s1593_s23 }
 0x69a   :  { %1151 = vrot.lane.b32.xlu0 %v2184_v54, %s1590_s20  ;;  %1211 = vrot.lane.b32.xlu1 %v2184_v54, %s1587_s17 }
 0x69e   :  { %1235 = vrot.lane.b32.xlu0 %v2192_v58, %s1586_s16  ;;  %1231 = vrot.lane.b32.xlu1 %v2184_v54, %s1586_s16 }
 0x6a2   :  { %1131 = vrot.lane.b32.xlu0 %v2184_v54, %s1591_s21  ;;  %1171 = vrot.lane.b32.xlu1 %v2184_v54, %s1588_s18 }
 0x6a6   :  { %1195 = vrot.lane.b32.xlu0 %v2192_v58, %s1589_s19  ;;  %1191 = vrot.lane.b32.xlu1 %v2184_v54, %s1589_s19 }
 0x6aa   :  { %1111 = vrot.lane.b32.xlu0 %v2184_v54, %s1593_s23  ;;  %1215 = vrot.lane.b32.xlu1 %v2192_v58, %s1587_s17 }
 0x6ae   :  { %1155 = vrot.lane.b32.xlu0 %v2192_v58, %s1590_s20  ;;  %1175 = vrot.lane.b32.xlu1 %v2192_v58, %s1588_s18 }
 0x6b2   :  { %1135 = vrot.lane.b32.xlu0 %v2192_v58, %s1591_s21  ;;  %1091 = vrot.lane.b32.xlu1 %v2184_v54, %s1592_s22 }
 0x6b6   :  { %1115 = vrot.lane.b32.xlu0 %v2192_v58, %s1593_s23  ;;  %1095 = vrot.lane.b32.xlu1 %v2192_v58, %s1592_s22 }
 0x6ec   :  { %v2222_v36 = vpop.permute.xlu0 %1213  ;;  %v1230_v52 = vpop.permute.xlu1 %1229 }
 0x6f0   :  { %v1234_v2 = vpop.permute.xlu0 %1233  ;;  %v1190_v51 = vpop.permute.xlu1 %1189 }
 0x6f4   :  { %v2224_v61 = vpop.permute.xlu0 %1173  ;;  %v1150_v19 = vpop.permute.xlu1 %1149 }
 0x6f5   :  { %v1164_v17 = vsel %vm258_vm13, 0.0, %v1150_v19 }
 0x6f6   :  { %v1165_v60 = vmul.f32 %v1755_v45, %v1164_v17 }
 0x6f8   :  { %v2226_v1 = vpop.permute.xlu0 %1193  ;;  %v1130_v13 = vpop.permute.xlu1 %1129 }
 0x6f9   :  { %v1144_v50 = vsel %vm237_vm0, 0.0, %v1130_v13 }
 0x6fc   :  { %v1170_v46 = vpop.permute.xlu0 %1169  ;;  %v2228_v6 = vpop.permute.xlu1 %1109 }
 0x700   :  { %v1210_v63 = vpop.permute.xlu0 %1209  ;;  %v2230_v7 = vpop.permute.xlu1 %1153 }
 0x704   :  { %v2232_v53 = vpop.permute.xlu0 %1089  ;;  %v2234_v41 = vpop.permute.xlu1 %1133 }
 0x708   :  { %v2236_v33 = vpop.permute.xlu0 %1093  ;;  %v2238_v49 = vpop.permute.xlu1 %1113 }
 0x70c   :  { %v1152_v43 = vpop.permute.xlu0 %1151  ;;  %v1212_v8 = vpop.permute.xlu1 %1211 }
 0x70d   :  { %v1218_v24 = vsel %vm321_vm5, %v1212_v8, %v2222_v36  ;;  %v1157_v28 = vsel %vm258_vm13, %v1150_v19, %v1152_v43  ;;  %v1217_v30 = vsel %vm321_vm5, %v1210_v63, %v1212_v8  ;;  %v1265_v19 = vrot.slane %v1165_v60, 4 }
 0x70e   :  { %v1226_v32 = vmul.f32 %v1704_v10, %v1218_v24  ;;  %v1166_v17 = vmul.f32 %v1725_v22, %v1157_v28 }
 0x710   :  { %v1236_v18 = vpop.permute.xlu0 %1235  ;;  %v1232_v20 = vpop.permute.xlu1 %1231 }
 0x711   :  { %v1239_v21 = vsel %vm342_vm2, %v1234_v2, %v1236_v18  ;;  %v1244_v23 = vsel %vm342_vm2, %v1236_v18, 0.0  ;;  %v1237_v26 = vsel %vm342_vm2, %v1230_v52, %v1232_v20  ;;  %v1238_v55 = vsel %vm342_vm2, %v1232_v20, %v1234_v2 }
 0x712   :  { %v1247_v4 = vmul.f32 %v1787_v3, %v1239_v21  ;;  %v1248_v47 = vmul.f32 %v1244_v23, %v1781_v5  ;;  %v1245_v0 = vmul.f32 %v1742_v31, %v1237_v26  ;;  %v1246_v27 = vmul.f32 %v1238_v55, %v1715_v14 }
 0x713   :  { %v1145_v52 = vmul.f32 %v1144_v50, %v1794_v16  ;;  %v1291_v21 = vrot.slane %v1217_v30, 4  ;;  %v1292_v23 = vrot.slane %v1226_v32, 4 }
 0x714   :  { %1558 = vmatprep.subr.msk.mxu1 %vm405_vm3, %v1248_v47  ;;  %v1132_v39 = vpop.permute.xlu0 %1131  ;;  %1555 = vmatprep.subr.msk.mxu0 %vm405_vm3, %v1246_v27  ;;  %v1172_v48 = vpop.permute.xlu1 %1171 }
 0x715   :  { %v1177_v5 = vsel %vm279_vm7, %v1170_v46, %v1172_v48  ;;  %v1178_v14 = vsel %vm279_vm7, %v1172_v48, %v2224_v61  ;;  %1556 = vmatpush1.msk.msra.mxu0 %vm405_vm3, %v1245_v0  ;;  %1559 = vmatpush1.msk.msra.mxu1 %vm405_vm3, %v1247_v4  ;;  %v1124_v46 = vsel %vm216_vm4, 0.0, %v2228_v6  ;;  %v1137_v63 = vsel %vm237_vm0, %v1130_v13, %v1132_v39 }
 0x716   :  { %v1186_v37 = vmul.f32 %v1707_v11, %v1178_v14  ;;  %v1185_v2 = vmul.f32 %v1742_v31, %v1177_v5  ;;  %v2276_v55 = vmul.f32 %v1775_v62, %v1124_v46  ;;  %v1303_v47 = vsel %vm405_vm3, %v1145_v52, %v1265_v19 }
 0x717   :  { %v1158_v13 = vsel %vm258_vm13, %v1152_v43, %v2230_v7  ;;  %v1266_v43 = vrot.slane %v1166_v17, 4  ;;  %v1138_v5 = vsel %vm237_vm0, %v1132_v39, %v2234_v41 }
 0x718   :  { %v1196_v18 = vpop.permute.xlu0 %1195  ;;  %v1192_v20 = vpop.permute.xlu1 %1191  ;;  %v1280_v16 = vrot.slane %v1186_v37, 4  ;;  %v1279_v4 = vrot.slane %v1185_v2, 4 }
 0x719   :  { %v1197_v10 = vsel %vm300_vm6, %v1190_v51, %v1192_v20  ;;  %v1198_v8 = vsel %vm300_vm6, %v1192_v20, %v2226_v1  ;;  %v1146_v51 = vmul.f32 %v1707_v11, %v1137_v63  ;;  %v1104_v11 = vsel %vm195_vm8, 0.0, %v2232_v53 }
 0x71a   :  { %v1205_v31 = vmul.f32 %v1755_v45, %v1197_v10  ;;  %v1206_v26 = vmul.f32 %v1198_v8, %v1733_v25  ;;  %v1199_v25 = vsel %vm300_vm6, %v2226_v1, %v1196_v18  ;;  %v1204_v45 = vsel %vm300_vm6, %v1196_v18, 0.0 }
 0x71b   :  { %v1308_v28 = vsel %vm405_vm3, %v2184_v54, %v1280_v16  ;;  %v1167_v1 = vmul.f32 %v1821_v40, %v1158_v13  ;;  %v1207_v30 = vmul.f32 %v1821_v40, %v1199_v25  ;;  %v1208_v32 = vmul.f32 %v1204_v45, %v1816_v34  ;;  %v1584_v25 = vld [vmem:[%s2370_s0] sm:$0xf] }
 0x71c   :  { %v1112_v0 = vpop.permute.xlu0 %1111  ;;  %v1216_v27 = vpop.permute.xlu1 %1215  ;;  %v1312_v24 = vsel %vm405_vm3, %v1206_v26, %v1292_v23  ;;  %v1311_v60 = vsel %vm405_vm3, %v1205_v31, %v1291_v21  ;;  %v1304_v54 = vsel %vm405_vm3, %v1146_v51, %v1266_v43  ;;  %v1105_v18 = vmul.f32 %v1104_v11, %v1846_v15 }
 0x71d   :  { %v1219_v62 = vsel %vm321_vm5, %v2222_v36, %v1216_v27  ;;  %v1224_v50 = vsel %vm321_vm5, %v1216_v27, 0.0  ;;  %1351 = vmatprep.subr.mxu0 %v1312_v24  ;;  %v1307_v36 = vsel %vm405_vm3, %v2143_v44, %v1279_v4  ;;  %v1117_v2 = vsel %vm216_vm4, %v2228_v6, %v1112_v0 }
 0x71e   :  { %v1228_v48 = vmul.f32 %v1764_v56, %v1224_v50  ;;  %1352 = vmatpush1.msra.mxu0 %v1311_v60  ;;  %v1293_v14 = vrot.slane %v1219_v62, 4  ;;  %v1253_v6 = vrot.slane %v2276_v55, 4  ;;  %v1147_v20 = vmul.f32 %v1138_v5, %v1870_v42 }
 0x71f   :  { %1353 = vmatprep.subr.mxu0 %v1308_v28  ;;  %v1118_v21 = vsel %vm216_vm4, %v1112_v0, %v2238_v49  ;;  %v1254_v23 = vrot.slane %v1117_v2, 4 }
 0x720   :  { %v1294_v37 = vrot.slane %v1228_v48, 4  ;;  %v1156_v56 = vpop.permute.xlu0 %1155  ;;  %1354 = vmatpush1.msra.mxu0 %v1307_v36  ;;  %v1176_v52 = vpop.permute.xlu1 %1175  ;;  %v1299_v0 = vsel %vm405_vm3, %v1105_v18, %v1253_v6 }
 0x721   :  { %v1159_v39 = vsel %vm258_vm13, %v2230_v7, %v1156_v56  ;;  %v1179_v19 = vsel %vm279_vm7, %v2224_v61, %v1176_v52  ;;  %v1184_v44 = vsel %vm279_vm7, %v1176_v52, 0.0  ;;  %1355 = vmatprep.subr.mxu0 %v1304_v54  ;;  %v1267_v7 = vrot.slane %v1167_v1, 4 }
 0x722   :  { %v1168_v34 = vmul.f32 %v1790_v9, %v1159_v39  ;;  %v1187_v40 = vmul.f32 %v1787_v3, %v1179_v19  ;;  %v1188_v46 = vmul.f32 %v1767_v57, %v1184_v44  ;;  %1356 = vmatpush1.msra.mxu0 %v1303_v47  ;;  %v1314_v17 = vsel %vm405_vm3, %v1208_v32, %v1294_v37 }
 0x723   :  { %1422 = vmatprep.subr.mxu1 %v1314_v17  ;;  %v1313_v61 = vsel %vm405_vm3, %v1207_v30, %v1293_v14  ;;  %v1127_v47 = vmul.f32 %v1854_v12, %v1118_v21 }
 0x724   :  { %v1281_v63 = vrot.slane %v1187_v40, 4  ;;  %v1282_v3 = vrot.slane %v1188_v46, 4  ;;  %v1136_v10 = vpop.permute.xlu0 %1135  ;;  %1423 = vmatpush1.msra.mxu1 %v1313_v61  ;;  %v1092_v8 = vpop.permute.xlu1 %1091  ;;  %v1268_v16 = vrot.slane %v1168_v34, 4 }
 0x725   :  { %v1139_v31 = vsel %vm237_vm0, %v2234_v41, %v1136_v10  ;;  %v1097_v15 = vsel %vm195_vm8, %v2232_v53, %v1092_v8  ;;  %v1098_v42 = vsel %vm195_vm8, %v1092_v8, %v2236_v33  ;;  %v1255_v60 = vrot.slane %v1127_v47, 4 }
 0x726   :  { %v1148_v26 = vmul.f32 %v1767_v57, %v1139_v31  ;;  %v1106_v55 = vmul.f32 %v1725_v22, %v1097_v15  ;;  %v1310_v4 = vsel %vm405_vm3, %v2192_v58, %v1282_v3  ;;  %v1309_v13 = vsel %vm405_vm3, %v2148_v38, %v1281_v63 }
 0x727   :  { %1424 = vmatprep.subr.mxu1 %v1310_v4  ;;  %v1305_v22 = vsel %vm405_vm3, %v1147_v20, %v1267_v7  ;;  %v1107_v27 = vmul.f32 %v1098_v42, %v1886_v29 }
 0x728   :  { %v1116_v41 = vpop.permute.xlu0 %1115  ;;  %1425 = vmatpush1.msra.mxu1 %v1309_v13  ;;  %v1096_v51 = vpop.permute.xlu1 %1095  ;;  %v1300_v53 = vsel %vm405_vm3, %v1106_v55, %v1254_v23  ;;  %v1306_v57 = vsel %vm405_vm3, %v1148_v26, %v1268_v16 }
 0x729   :  { %v1119_v12 = vsel %vm216_vm4, %v2238_v49, %v1116_v41  ;;  %v1099_v58 = vsel %vm195_vm8, %v2236_v33, %v1096_v51  ;;  %1357 = vmatprep.subr.mxu0 %v1300_v53  ;;  %1426 = vmatprep.subr.mxu1 %v1306_v57  ;;  %v1301_v49 = vsel %vm405_vm3, %v1107_v27, %v1255_v60 }
 0x72a   :  { %v1256_v38 = vrot.slane %v1119_v12, 4  ;;  %v1108_v24 = vmul.f32 %v1790_v9, %v1099_v58  ;;  %1358 = vmatpush1.msra.mxu0 %v1299_v0  ;;  %1427 = vmatpush1.msra.mxu1 %v1305_v22 }
 0x72b   :  { %1557 = vmatmul.mubr.msk.f32.vlgmr.msra.gmra.mxu0 %vm422_vm10, %v1584_v25 }
 0x72c   :  { %v1302_v29 = vsel %vm405_vm3, %v1108_v24, %v1256_v38 }
 0x72d   :  { %1428 = vmatprep.subr.mxu1 %v1302_v29 }
 0x72e   :  { %1429 = vmatpush1.msra.mxu1 %v1301_v49 }
 0x72f   :  { %1560 = vmatmul.mubr.msk.f32.vlgmr.msra.gmra.mxu1 %vm422_vm10, %v1584_v25 }
 0x7eb   :  { %v1393_v33 = vpop.f32.mrf.mxu0 }
 0x7ec   :  { %v1469_v9 = vsel %vm405_vm3, %v1393_v33, 0.0 }
 0x7ed   :  { %v1395_v45 = vpop.f32.mrf.mxu0 }
 0x7ee   :  { %v1470_v62 = vsel %vm405_vm3, %v1395_v45, 0.0 }
 0x7ef   :  { %v1471_v50 = vadd.f32 %v1470_v62, %v1469_v9  ;;  %v1464_v11 = vpop.f32.mrf.mxu1 }
 0x7f0   :  { %v1472_v43 = vsel %vm405_vm3, %v1464_v11, 0.0 }
 0x7f1   :  { %v1473_v48 = vadd.f32 %v1472_v43, %v1471_v50  ;;  %v1466_v28 = vpop.f32.mrf.mxu1 }
 0x7f2   :  { %v1474_v1 = vsel %vm405_vm3, %v1466_v28, 0.0 }
 0x7f3   :  { %v1475_v5 = vadd.f32 %v1474_v1, %v1473_v48 }
 0x7f5   :  { %1476 = vadd.xlane.f32.xlu1 %v1475_v5 }
 0x87e   :  { %v1477_v14 = vpop.xlane.xlu1 %1476 }
 0x87f   :  { %v1478_v36 = vmul.f32 0.001953125, %v1477_v14 }
 0x881   :  { %v1479_v30 = vsub.f32 %v1393_v33, %v1478_v36  ;;  %v1480_v32 = vsub.f32 %v1395_v45, %v1478_v36  ;;  %v1481_v37 = vsub.f32 %v1464_v11, %v1478_v36  ;;  %v1482_v56 = vsub.f32 %v1466_v28, %v1478_v36 }
 0x883   :  { %v1483_v52 = vmul.f32 %v1479_v30, %v1479_v30  ;;  %v1484_v54 = vmul.f32 %v1480_v32, %v1480_v32  ;;  %v1485_v2 = vmul.f32 %v1481_v37, %v1481_v37  ;;  %v1486_v39 = vmul.f32 %v1482_v56, %v1482_v56 }
 0x885   :  { %v1487_v19 = vsel %vm405_vm3, %v1483_v52, 0.0  ;;  %v1488_v44 = vsel %vm405_vm3, %v1484_v54, 0.0  ;;  %v1490_v40 = vsel %vm405_vm3, %v1485_v2, 0.0  ;;  %v1492_v17 = vsel %vm405_vm3, %v1486_v39, 0.0 }
 0x886   :  { %v1489_v34 = vadd.f32 %v1488_v44, %v1487_v19 }
 0x888   :  { %v1491_v46 = vadd.f32 %v1490_v40, %v1489_v34 }
 0x88a   :  { %v1493_v6 = vadd.f32 %v1492_v17, %v1491_v46 }
 0x88c   :  { %1494 = vadd.xlane.f32.xlu0 %v1493_v6 }
 0x915   :  { %v1495_v18 = vpop.xlane.xlu0 %1494 }
 0x916   :  { %v1496_v7 = vmul.f32 0.001953125, %v1495_v18 }
 0x918   :  { %v1497_v61 = vadd.f32 1e-05, %v1496_v7 }
 0x91a   :  { %1580 = vrsqrt.f32 %v1497_v61 }
 0x927   :  { %v1581_v20 = vpop.eup %1580 }
 0x928   :  { %v1499_v21 = vmul.f32 %v1581_v20, %v1909_v59 }
 0x92a   :  { %1502 = vperm.xlu0 %1572, %v1499_v21  }
 0x9a5   :  { %v1503_v63 = vpop.permute.xlu0 %1502 }
 0x9a6   :  { %v1505_v3 = vmul.f32 %v1503_v63, %v1479_v30  ;;  %v1506_v10 = vmul.f32 %v1503_v63, %v1480_v32  ;;  %v1507_v8 = vmul.f32 %v1503_v63, %v1481_v37  ;;  %v1508_v23 = vmul.f32 %v1503_v63, %v1482_v56 }
 0x9a8   :  { %v1509_v16 = vadd.f32 %v1505_v3, %v1913_v35  ;;  %v1510_v31 = vadd.f32 %v1506_v10, %v1913_v35  ;;  %v1511_v15 = vadd.f32 %v1507_v8, %v1913_v35  ;;  %v1512_v26 = vadd.f32 %v1508_v23, %v1913_v35 }
 0x9aa   :  { %v1513_v42 = vmax.f32 %v1509_v16, 0.0  ;;  %v1514_v55 = vmax.f32 %v1510_v31, 0.0  ;;  %v1515_v4 = vmax.f32 %v1511_v15, 0.0  ;;  %v1516_v47 = vmax.f32 %v1512_v26, 0.0 }
 0x9ac   :  { %v1521_v13 = vcombine.low %v1513_v42, %v1514_v55  ;;  %v1522_v59 = vcombine.low %v1515_v4, %v1516_v47 }
 0x9ae   :  { %1525 = vst [vmem:[%s2372_s3] sm:$0xff] %v1521_v13  ;;  %1526 = vst [vmem:[%s2372_s3 + $0x8] sm:$0xff] %v1522_v59 }

</bundles_post_ra>
